<compile_context>
chip_gen: v6e
topology: v6e:2x2x1
jax: 0.10.0
libtpu: 0.0.40
codegen_flags: <defaults>
</compile_context>

<pallas_src>
import jax
import jax.numpy as jnp
import numpy as np
from jax.experimental import pallas as pl
from jax.experimental.pallas import tpu as pltpu


def _vmem_limit_bytes(cin, cout, hpwp, l, itemsize):
    """Explicit scoped-VMEM request derived from the real per-step footprint."""
    in_bytes = 2 * cin * hpwp * itemsize              # x block, double-buffered
    out_bytes = 2 * cout * hpwp * itemsize + 4 * cout * 2 * 4
    resident = 9 * cout * cin * itemsize + cout * 4 + l * 4
    temps = 10 * cout * l * 4 + cin * hpwp * 4        # f32 accumulator + slices
    est = in_bytes + out_bytes + resident + temps
    return int(min(max(4 * est, 8 * 1024 * 1024), 48 * 1024 * 1024))


# --------------------------------------------------------------------------
# Fused kernel: 3x3 "same" conv + bias + ReLU  (+ optional per-channel stats)
# --------------------------------------------------------------------------
def conv3x3_relu_block(x_flat, weight, bias, H, W, *, want_feat, want_stats,
                       stream_dtype=jnp.bfloat16):
    """x_flat: (N, Cin, (H+2)*(W+2)) zero-padded/flattened activations.

    Returns (feat, stats):
      feat  : (N, Cout, (H+2)*(W+2)) padded/flattened activation (or None)
      stats : (N, Cout, 2) with [...,0]=mean, [...,1]=var over the H*W real
              pixels (or None)
    """
    N, Cin, HpWp = (int(d) for d in x_flat.shape)
    Hp, Wp = H + 2, W + 2
    assert HpWp == Hp * Wp
    Cout = int(weight.shape[0])
    L = HpWp - 2 * (Wp + 1)          # "central" flat region: rows 1..H fully covered

    # Weights ordered (dh, dw, Cout, Cin) so w9[dh*3+dw] == weight[:, :, dh, dw].
    w9 = jnp.transpose(weight, (2, 3, 0, 1)).reshape(9, Cout, Cin).astype(stream_dtype)
    b2 = bias.reshape(Cout, 1).astype(jnp.float32)

    # Lane mask over the central region: 1 at real pixels, 0 at pad columns.
    j = np.arange(L)
    col = (j + Wp + 1) % Wp
    mask2d = jnp.asarray(((col >= 1) & (col <= W)).astype(np.float32).reshape(1, L))

    inv_p = float(1.0 / (H * W))

    def kernel(w_ref, b_ref, m_ref, x_ref, *out_refs):
        x = x_ref[0]                                   # (Cin, HpWp), stream dtype
        acc = jnp.zeros((Cout, L), jnp.float32)
        # In-kernel im2col: 9 shifted matmuls accumulated in f32 on the MXU.
        for dh in range(3):
            for dw in range(3):
                s = dh * Wp + dw                       # static slice start
                acc = acc + jnp.dot(w_ref[dh * 3 + dw], x[:, s:s + L],
                                    preferred_element_type=jnp.float32)
        acc = jnp.maximum(acc + b_ref[...], 0.0) * m_ref[...]   # bias + ReLU + pad mask
        q = acc.astype(stream_dtype)

        oi = 0
        if want_feat:
            # Emit the zero-padded flattened layout the next layer consumes.
            padz = jnp.zeros((Cout, Wp + 1), stream_dtype)
            out_refs[oi][0] = jnp.concatenate([padz, q, padz], axis=1)
            oi += 1
        if want_stats:
            qf = q.astype(jnp.float32)
            mean = jnp.sum(qf, axis=-1, keepdims=True) * inv_p     # pads are 0
            ex2 = jnp.sum(qf * qf, axis=-1, keepdims=True) * inv_p
            var = jnp.maximum(ex2 - mean * mean, 0.0)
            out_refs[oi][0] = jnp.concatenate([mean, var], axis=1)  # (Cout, 2)

    out_shapes, out_specs = [], []
    if want_feat:
        out_shapes.append(jax.ShapeDtypeStruct((N, Cout, HpWp), stream_dtype))
        out_specs.append(pl.BlockSpec((1, Cout, HpWp), lambda n: (n, 0, 0)))
    if want_stats:
        out_shapes.append(jax.ShapeDtypeStruct((N, Cout, 2), jnp.float32))
        out_specs.append(pl.BlockSpec((1, Cout, 2), lambda n: (n, 0, 0)))

    itemsize = jnp.dtype(stream_dtype).itemsize
    outs = pl.pallas_call(
        kernel,
        out_shape=tuple(out_shapes),
        grid=(N,),
        in_specs=[
            pl.BlockSpec((9, Cout, Cin), lambda n: (0, 0, 0)),   # weights (resident)
            pl.BlockSpec((Cout, 1), lambda n: (0, 0)),           # bias    (resident)
            pl.BlockSpec((1, L), lambda n: (0, 0)),              # pad mask(resident)
            pl.BlockSpec((1, Cin, HpWp), lambda n: (n, 0, 0)),   # per-image activations
        ],
        out_specs=tuple(out_specs),
        compiler_params=pltpu.CompilerParams(
            dimension_semantics=("parallel",),
            vmem_limit_bytes=_vmem_limit_bytes(Cin, Cout, HpWp, L, itemsize)),
    )(w9, b2, mask2d, x_flat)

    outs = list(outs)
    feat = outs.pop(0) if want_feat else None
    stats = outs.pop(0) if want_stats else None
    return feat, stats


# --------------------------------------------------------------------------
# Plain-JAX glue (cheap, layout-preserving)
# --------------------------------------------------------------------------
def pad_and_flatten(x, dtype):
    n, c, h, w = x.shape
    xp = jnp.pad(x.astype(dtype), ((0, 0), (0, 0), (1, 1), (1, 1)))
    return xp.reshape(n, c, (h + 2) * (w + 2))


def maxpool2x2_pad_flat(feat_flat, H, W):
    n, c, _ = feat_flat.shape
    f = feat_flat.reshape(n, c, H + 2, W + 2)[:, :, 1:H + 1, 1:W + 1]
    p = f.reshape(n, c, H // 2, 2, W // 2, 2).max(axis=(3, 5))
    p = jnp.pad(p, ((0, 0), (0, 0), (1, 1), (1, 1)))
    return p.reshape(n, c, (H // 2 + 2) * (W // 2 + 2))


# --------------------------------------------------------------------------
# LossTexture.forward (mask=None): features stack + fused per-scale stats
# --------------------------------------------------------------------------
def loss_texture_forward(x, params, stream_dtype=jnp.bfloat16):
    (w11, b11), (w12, b12), (w21, b21) = params
    _, _, H, W = x.shape
    a0 = pad_and_flatten(x, stream_dtype)

    # scale-1 first ReLU: feature for the next layer + fused stats
    f1, s1 = conv3x3_relu_block(a0, w11, b11, H, W,
                                want_feat=True, want_stats=True,
                                stream_dtype=stream_dtype)
    # scale-1 second conv (feature only)
    f2, _ = conv3x3_relu_block(f1, w12, b12, H, W,
                               want_feat=True, want_stats=False,
                               stream_dtype=stream_dtype)
    p = maxpool2x2_pad_flat(f2, H, W)
    H2, W2 = H // 2, W // 2
    # scale-2 first ReLU: stats only, feature map never written to HBM
    _, s2 = conv3x3_relu_block(p, w21, b21, H2, W2,
                               want_feat=False, want_stats=True,
                               stream_dtype=stream_dtype)

    return jnp.concatenate([s1[:, :, 0], s1[:, :, 1],
                            s2[:, :, 0], s2[:, :, 1]], axis=1)


# --------------------------------------------------------------------------
# Pure-JAX reference (quantization-matched bf16 streams, f32 accumulate)
# --------------------------------------------------------------------------
def _ref_forward(x, params, stream_dtype=jnp.bfloat16):
    def conv_relu(h, w, b):
        y = jax.lax.conv_general_dilated(
            h.astype(stream_dtype), w.astype(stream_dtype), (1, 1), "SAME",
            dimension_numbers=("NCHW", "OIHW", "NCHW"),
            preferred_element_type=jnp.float32)
        return jnp.maximum(y + b.reshape(1, -1, 1, 1), 0.0).astype(stream_dtype)

    def stats(f):
        g = f.astype(jnp.float32).reshape(f.shape[0], f.shape[1], -1)
        m = g.mean(axis=2)
        v = jnp.maximum((g * g).mean(axis=2) - m * m, 0.0)
        return m, v

    (w11, b11), (w12, b12), (w21, b21) = params
    f1 = conv_relu(x, w11, b11)
    m1, v1 = stats(f1)
    f2 = conv_relu(f1, w12, b12)
    n, c, h, w = f2.shape
    p = f2.reshape(n, c, h // 2, 2, w // 2, 2).max(axis=(3, 5))
    f3 = conv_relu(p, w21, b21)
    m2, v2 = stats(f3)
    return jnp.concatenate([m1, v1, m2, v2], axis=1)


if __name__ == "__main__":
    key = jax.random.PRNGKey(0)
    kx, kw1, kb1, kw2, kb2, kw3, kb3 = jax.random.split(key, 7)

    N, H, W = 2, 16, 16
    C0, C1, C2 = 3, 16, 32

    x = jax.random.normal(kx, (N, C0, H, W), dtype=jnp.float32)

    def conv_init(kw, kb, cin, cout):
        w = 0.1 * jax.random.normal(kw, (cout, cin, 3, 3), dtype=jnp.float32)
        b = 0.1 * jax.random.normal(kb, (cout,), dtype=jnp.float32)
        return w, b

    params = [conv_init(kw1, kb1, C0, C1),
              conv_init(kw2, kb2, C1, C1),
              conv_init(kw3, kb3, C1, C2)]

    @jax.jit
    def fwd(x, params):
        return loss_texture_forward(x, params, stream_dtype=jnp.bfloat16)

    out = jax.block_until_ready(fwd(x, params))
    ref = jax.block_until_ready(_ref_forward(x, params, jnp.bfloat16))

    assert out.shape == (N, 2 * (C1 + C2)), out.shape
    err = float(jnp.max(jnp.abs(out.astype(jnp.float32) - ref.astype(jnp.float32))))
    assert err < 2e-2, err

    print("KERNEL_OK")
</pallas_src>

<mosaic_0001>
module attributes {stable_mosaic.version = 11 : i64} {
  func.func @kernel(%arg0: i32, %arg1: memref<9x16x16xbf16, #tpu.memory_space<vmem>>, %arg2: memref<16x1xf32, #tpu.memory_space<vmem>>, %arg3: memref<1x286xf32, #tpu.memory_space<vmem>>, %arg4: memref<1x16x324xbf16, #tpu.memory_space<vmem>>, %arg5: memref<1x16x324xbf16, #tpu.memory_space<vmem>>) attributes {dimension_semantics = [#tpu.dimension_semantics<parallel>], iteration_bounds = array<i64: 2>, scalar_prefetch = 0 : i64, scratch_operands = 0 : i64, tpu.core_type = #tpu.core_type<tc>, window_params = [{pipeline_mode = #tpu.pipeline_mode<synchronous>, transform_indices = @transform_0, window_bounds = array<i64: 9, 16, 16>}, {pipeline_mode = #tpu.pipeline_mode<synchronous>, transform_indices = @transform_1, window_bounds = array<i64: 16, 1>}, {pipeline_mode = #tpu.pipeline_mode<synchronous>, transform_indices = @transform_2, window_bounds = array<i64: 1, 286>}, {transform_indices = @transform_3, window_bounds = array<i64: 1, 16, 324>}, {transform_indices = @transform_4, window_bounds = array<i64: 1, 16, 324>}]} {
    %c0 = arith.constant 0 : index
    %c0_0 = arith.constant 0 : index
    %c0_1 = arith.constant 0 : index
    %0 = vector.load %arg4[%c0, %c0_0, %c0_1] : memref<1x16x324xbf16, #tpu.memory_space<vmem>>, vector<1x16x324xbf16>
    %1 = vector.shape_cast %0 : vector<1x16x324xbf16> to vector<16x324xbf16>
    %cst = arith.constant 0.000000e+00 : f32
    %2 = vector.broadcast %cst : f32 to vector<16x286xf32>
    %c0_2 = arith.constant 0 : index
    %c0_3 = arith.constant 0 : index
    %c0_4 = arith.constant 0 : index
    %3 = vector.load %arg1[%c0_2, %c0_3, %c0_4] : memref<9x16x16xbf16, #tpu.memory_space<vmem>>, vector<1x16x16xbf16>
    %4 = vector.shape_cast %3 : vector<1x16x16xbf16> to vector<16x16xbf16>
    %5 = vector.extract_strided_slice %1 {offsets = [0, 0], sizes = [16, 286], strides = [1, 1]} : vector<16x324xbf16> to vector<16x286xbf16>
    %cst_5 = arith.constant dense<0.000000e+00> : vector<16x286xf32>
    %6 = tpu.matmul %4, %5, %cst_5 {dimension_numbers = #tpu.dot_dimension_numbers<[1], [0], [0], [1], [0, 0, 1, 1], [], []>} : vector<16x16xbf16>, vector<16x286xbf16>, vector<16x286xf32> -> vector<16x286xf32>
    %7 = arith.addf %2, %6 : vector<16x286xf32>
    %c1 = arith.constant 1 : index
    %c0_6 = arith.constant 0 : index
    %c0_7 = arith.constant 0 : index
    %8 = vector.load %arg1[%c1, %c0_6, %c0_7] : memref<9x16x16xbf16, #tpu.memory_space<vmem>>, vector<1x16x16xbf16>
    %9 = vector.shape_cast %8 : vector<1x16x16xbf16> to vector<16x16xbf16>
    %10 = vector.extract_strided_slice %1 {offsets = [0, 1], sizes = [16, 286], strides = [1, 1]} : vector<16x324xbf16> to vector<16x286xbf16>
    %cst_8 = arith.constant dense<0.000000e+00> : vector<16x286xf32>
    %11 = tpu.matmul %9, %10, %cst_8 {dimension_numbers = #tpu.dot_dimension_numbers<[1], [0], [0], [1], [0, 0, 1, 1], [], []>} : vector<16x16xbf16>, vector<16x286xbf16>, vector<16x286xf32> -> vector<16x286xf32>
    %12 = arith.addf %7, %11 : vector<16x286xf32>
    %c2 = arith.constant 2 : index
    %c0_9 = arith.constant 0 : index
    %c0_10 = arith.constant 0 : index
    %13 = vector.load %arg1[%c2, %c0_9, %c0_10] : memref<9x16x16xbf16, #tpu.memory_space<vmem>>, vector<1x16x16xbf16>
    %14 = vector.shape_cast %13 : vector<1x16x16xbf16> to vector<16x16xbf16>
    %15 = vector.extract_strided_slice %1 {offsets = [0, 2], sizes = [16, 286], strides = [1, 1]} : vector<16x324xbf16> to vector<16x286xbf16>
    %cst_11 = arith.constant dense<0.000000e+00> : vector<16x286xf32>
    %16 = tpu.matmul %14, %15, %cst_11 {dimension_numbers = #tpu.dot_dimension_numbers<[1], [0], [0], [1], [0, 0, 1, 1], [], []>} : vector<16x16xbf16>, vector<16x286xbf16>, vector<16x286xf32> -> vector<16x286xf32>
    %17 = arith.addf %12, %16 : vector<16x286xf32>
    %c3 = arith.constant 3 : index
    %c0_12 = arith.constant 0 : index
    %c0_13 = arith.constant 0 : index
    %18 = vector.load %arg1[%c3, %c0_12, %c0_13] : memref<9x16x16xbf16, #tpu.memory_space<vmem>>, vector<1x16x16xbf16>
    %19 = vector.shape_cast %18 : vector<1x16x16xbf16> to vector<16x16xbf16>
    %20 = vector.extract_strided_slice %1 {offsets = [0, 18], sizes = [16, 286], strides = [1, 1]} : vector<16x324xbf16> to vector<16x286xbf16>
    %cst_14 = arith.constant dense<0.000000e+00> : vector<16x286xf32>
    %21 = tpu.matmul %19, %20, %cst_14 {dimension_numbers = #tpu.dot_dimension_numbers<[1], [0], [0], [1], [0, 0, 1, 1], [], []>} : vector<16x16xbf16>, vector<16x286xbf16>, vector<16x286xf32> -> vector<16x286xf32>
    %22 = arith.addf %17, %21 : vector<16x286xf32>
    %c4 = arith.constant 4 : index
    %c0_15 = arith.constant 0 : index
    %c0_16 = arith.constant 0 : index
    %23 = vector.load %arg1[%c4, %c0_15, %c0_16] : memref<9x16x16xbf16, #tpu.memory_space<vmem>>, vector<1x16x16xbf16>
    %24 = vector.shape_cast %23 : vector<1x16x16xbf16> to vector<16x16xbf16>
    %25 = vector.extract_strided_slice %1 {offsets = [0, 19], sizes = [16, 286], strides = [1, 1]} : vector<16x324xbf16> to vector<16x286xbf16>
    %cst_17 = arith.constant dense<0.000000e+00> : vector<16x286xf32>
    %26 = tpu.matmul %24, %25, %cst_17 {dimension_numbers = #tpu.dot_dimension_numbers<[1], [0], [0], [1], [0, 0, 1, 1], [], []>} : vector<16x16xbf16>, vector<16x286xbf16>, vector<16x286xf32> -> vector<16x286xf32>
    %27 = arith.addf %22, %26 : vector<16x286xf32>
    %c5 = arith.constant 5 : index
    %c0_18 = arith.constant 0 : index
    %c0_19 = arith.constant 0 : index
    %28 = vector.load %arg1[%c5, %c0_18, %c0_19] : memref<9x16x16xbf16, #tpu.memory_space<vmem>>, vector<1x16x16xbf16>
    %29 = vector.shape_cast %28 : vector<1x16x16xbf16> to vector<16x16xbf16>
    %30 = vector.extract_strided_slice %1 {offsets = [0, 20], sizes = [16, 286], strides = [1, 1]} : vector<16x324xbf16> to vector<16x286xbf16>
    %cst_20 = arith.constant dense<0.000000e+00> : vector<16x286xf32>
    %31 = tpu.matmul %29, %30, %cst_20 {dimension_numbers = #tpu.dot_dimension_numbers<[1], [0], [0], [1], [0, 0, 1, 1], [], []>} : vector<16x16xbf16>, vector<16x286xbf16>, vector<16x286xf32> -> vector<16x286xf32>
    %32 = arith.addf %27, %31 : vector<16x286xf32>
    %c6 = arith.constant 6 : index
    %c0_21 = arith.constant 0 : index
    %c0_22 = arith.constant 0 : index
    %33 = vector.load %arg1[%c6, %c0_21, %c0_22] : memref<9x16x16xbf16, #tpu.memory_space<vmem>>, vector<1x16x16xbf16>
    %34 = vector.shape_cast %33 : vector<1x16x16xbf16> to vector<16x16xbf16>
    %35 = vector.extract_strided_slice %1 {offsets = [0, 36], sizes = [16, 286], strides = [1, 1]} : vector<16x324xbf16> to vector<16x286xbf16>
    %cst_23 = arith.constant dense<0.000000e+00> : vector<16x286xf32>
    %36 = tpu.matmul %34, %35, %cst_23 {dimension_numbers = #tpu.dot_dimension_numbers<[1], [0], [0], [1], [0, 0, 1, 1], [], []>} : vector<16x16xbf16>, vector<16x286xbf16>, vector<16x286xf32> -> vector<16x286xf32>
    %37 = arith.addf %32, %36 : vector<16x286xf32>
    %c7 = arith.constant 7 : index
    %c0_24 = arith.constant 0 : index
    %c0_25 = arith.constant 0 : index
    %38 = vector.load %arg1[%c7, %c0_24, %c0_25] : memref<9x16x16xbf16, #tpu.memory_space<vmem>>, vector<1x16x16xbf16>
    %39 = vector.shape_cast %38 : vector<1x16x16xbf16> to vector<16x16xbf16>
    %40 = vector.extract_strided_slice %1 {offsets = [0, 37], sizes = [16, 286], strides = [1, 1]} : vector<16x324xbf16> to vector<16x286xbf16>
    %cst_26 = arith.constant dense<0.000000e+00> : vector<16x286xf32>
    %41 = tpu.matmul %39, %40, %cst_26 {dimension_numbers = #tpu.dot_dimension_numbers<[1], [0], [0], [1], [0, 0, 1, 1], [], []>} : vector<16x16xbf16>, vector<16x286xbf16>, vector<16x286xf32> -> vector<16x286xf32>
    %42 = arith.addf %37, %41 : vector<16x286xf32>
    %c8 = arith.constant 8 : index
    %c0_27 = arith.constant 0 : index
    %c0_28 = arith.constant 0 : index
    %43 = vector.load %arg1[%c8, %c0_27, %c0_28] : memref<9x16x16xbf16, #tpu.memory_space<vmem>>, vector<1x16x16xbf16>
    %44 = vector.shape_cast %43 : vector<1x16x16xbf16> to vector<16x16xbf16>
    %45 = vector.extract_strided_slice %1 {offsets = [0, 38], sizes = [16, 286], strides = [1, 1]} : vector<16x324xbf16> to vector<16x286xbf16>
    %cst_29 = arith.constant dense<0.000000e+00> : vector<16x286xf32>
    %46 = tpu.matmul %44, %45, %cst_29 {dimension_numbers = #tpu.dot_dimension_numbers<[1], [0], [0], [1], [0, 0, 1, 1], [], []>} : vector<16x16xbf16>, vector<16x286xbf16>, vector<16x286xf32> -> vector<16x286xf32>
    %47 = arith.addf %42, %46 : vector<16x286xf32>
    %c0_30 = arith.constant 0 : index
    %c0_31 = arith.constant 0 : index
    %48 = vector.load %arg2[%c0_30, %c0_31] : memref<16x1xf32, #tpu.memory_space<vmem>>, vector<16x1xf32>
    %49 = vector.broadcast %48 : vector<16x1xf32> to vector<16x286xf32>
    %50 = arith.addf %47, %49 : vector<16x286xf32>
    %cst_32 = arith.constant 0.000000e+00 : f32
    %51 = vector.broadcast %cst_32 : f32 to vector<16x286xf32>
    %52 = arith.maximumf %50, %51 : vector<16x286xf32>
    %c0_33 = arith.constant 0 : index
    %c0_34 = arith.constant 0 : index
    %53 = vector.load %arg3[%c0_33, %c0_34] : memref<1x286xf32, #tpu.memory_space<vmem>>, vector<1x286xf32>
    %54 = vector.broadcast %53 : vector<1x286xf32> to vector<16x286xf32>
    %55 = arith.mulf %52, %54 : vector<16x286xf32>
    %56 = arith.truncf %55 : vector<16x286xf32> to vector<16x286xbf16>
    %cst_35 = arith.constant 0.000000e+00 : bf16
    %57 = vector.broadcast %cst_35 : bf16 to vector<16x19xbf16>
    %58 = tpu.concatenate %57, %56, %57 in 1 : vector<16x19xbf16>, vector<16x286xbf16>, vector<16x19xbf16> -> vector<16x324xbf16>
    %c0_36 = arith.constant 0 : index
    %c0_37 = arith.constant 0 : index
    %c0_38 = arith.constant 0 : index
    %59 = vector.load %arg5[%c0_36, %c0_37, %c0_38] : memref<1x16x324xbf16, #tpu.memory_space<vmem>>, vector<1x16x324xbf16>
    %60 = vector.shape_cast %59 : vector<1x16x324xbf16> to vector<16x324xbf16>
    %61 = vector.shape_cast %58 : vector<16x324xbf16> to vector<1x16x324xbf16>
    tpu.vector_store %arg5[%c0_36, %c0_37, %c0_38], %61 {strides = array<i32>} : memref<1x16x324xbf16, #tpu.memory_space<vmem>>, vector<1x16x324xbf16>,
    return
  }
  func.func @transform_0(%arg0: i32) -> (i32, i32, i32) {
    %c0_i32 = arith.constant 0 : i32
    %c0_i32_0 = arith.constant 0 : i32
    %c0_i32_1 = arith.constant 0 : i32
    %c0_i32_2 = arith.constant 0 : i32
    return %c0_i32, %c0_i32_0, %c0_i32_1 : i32, i32, i32
  }
  func.func @transform_1(%arg0: i32) -> (i32, i32) {
    %c0_i32 = arith.constant 0 : i32
    %c0_i32_0 = arith.constant 0 : i32
    %c0_i32_1 = arith.constant 0 : i32
    return %c0_i32, %c0_i32_0 : i32, i32
  }
  func.func @transform_2(%arg0: i32) -> (i32, i32) {
    %c0_i32 = arith.constant 0 : i32
    %c0_i32_0 = arith.constant 0 : i32
    %c0_i32_1 = arith.constant 0 : i32
    return %c0_i32, %c0_i32_0 : i32, i32
  }
  func.func @transform_3(%arg0: i32) -> (i32, i32, i32) {
    %c0_i32 = arith.constant 0 : i32
    %c0_i32_0 = arith.constant 0 : i32
    %c0_i32_1 = arith.constant 0 : i32
    return %arg0, %c0_i32, %c0_i32_0 : i32, i32, i32
  }
  func.func @transform_4(%arg0: i32) -> (i32, i32, i32) {
    %c0_i32 = arith.constant 0 : i32
    %c0_i32_0 = arith.constant 0 : i32
    %c0_i32_1 = arith.constant 0 : i32
    return %arg0, %c0_i32, %c0_i32_0 : i32, i32, i32
  }
}

module attributes {stable_mosaic.version = 11 : i64} {
  func.func @kernel(%arg0: i32, %arg1: memref<9x16x3xbf16, #tpu.memory_space<vmem>>, %arg2: memref<16x1xf32, #tpu.memory_space<vmem>>, %arg3: memref<1x286xf32, #tpu.memory_space<vmem>>, %arg4: memref<1x3x324xbf16, #tpu.memory_space<vmem>>, %arg5: memref<1x16x324xbf16, #tpu.memory_space<vmem>>, %arg6: memref<1x16x2xf32, #tpu.memory_space<vmem>>) attributes {dimension_semantics = [#tpu.dimension_semantics<parallel>], iteration_bounds = array<i64: 2>, scalar_prefetch = 0 : i64, scratch_operands = 0 : i64, tpu.core_type = #tpu.core_type<tc>, window_params = [{pipeline_mode = #tpu.pipeline_mode<synchronous>, transform_indices = @transform_0, window_bounds = array<i64: 9, 16, 3>}, {pipeline_mode = #tpu.pipeline_mode<synchronous>, transform_indices = @transform_1, window_bounds = array<i64: 16, 1>}, {pipeline_mode = #tpu.pipeline_mode<synchronous>, transform_indices = @transform_2, window_bounds = array<i64: 1, 286>}, {transform_indices = @transform_3, window_bounds = array<i64: 1, 3, 324>}, {transform_indices = @transform_4, window_bounds = array<i64: 1, 16, 324>}, {transform_indices = @transform_5, window_bounds = array<i64: 1, 16, 2>}]} {
    %c0 = arith.constant 0 : index
    %c0_0 = arith.constant 0 : index
    %c0_1 = arith.constant 0 : index
    %0 = vector.load %arg4[%c0, %c0_0, %c0_1] : memref<1x3x324xbf16, #tpu.memory_space<vmem>>, vector<1x3x324xbf16>
    %1 = vector.shape_cast %0 : vector<1x3x324xbf16> to vector<3x324xbf16>
    %cst = arith.constant 0.000000e+00 : f32
    %2 = vector.broadcast %cst : f32 to vector<16x286xf32>
    %c0_2 = arith.constant 0 : index
    %c0_3 = arith.constant 0 : index
    %c0_4 = arith.constant 0 : index
    %3 = vector.load %arg1[%c0_2, %c0_3, %c0_4] : memref<9x16x3xbf16, #tpu.memory_space<vmem>>, vector<1x16x3xbf16>
    %4 = vector.shape_cast %3 : vector<1x16x3xbf16> to vector<16x3xbf16>
    %5 = vector.extract_strided_slice %1 {offsets = [0, 0], sizes = [3, 286], strides = [1, 1]} : vector<3x324xbf16> to vector<3x286xbf16>
    %cst_5 = arith.constant dense<0.000000e+00> : vector<16x286xf32>
    %6 = tpu.matmul %4, %5, %cst_5 {dimension_numbers = #tpu.dot_dimension_numbers<[1], [0], [0], [1], [0, 0, 1, 1], [], []>} : vector<16x3xbf16>, vector<3x286xbf16>, vector<16x286xf32> -> vector<16x286xf32>
    %7 = arith.addf %2, %6 : vector<16x286xf32>
    %c1 = arith.constant 1 : index
    %c0_6 = arith.constant 0 : index
    %c0_7 = arith.constant 0 : index
    %8 = vector.load %arg1[%c1, %c0_6, %c0_7] : memref<9x16x3xbf16, #tpu.memory_space<vmem>>, vector<1x16x3xbf16>
    %9 = vector.shape_cast %8 : vector<1x16x3xbf16> to vector<16x3xbf16>
    %10 = vector.extract_strided_slice %1 {offsets = [0, 1], sizes = [3, 286], strides = [1, 1]} : vector<3x324xbf16> to vector<3x286xbf16>
    %cst_8 = arith.constant dense<0.000000e+00> : vector<16x286xf32>
    %11 = tpu.matmul %9, %10, %cst_8 {dimension_numbers = #tpu.dot_dimension_numbers<[1], [0], [0], [1], [0, 0, 1, 1], [], []>} : vector<16x3xbf16>, vector<3x286xbf16>, vector<16x286xf32> -> vector<16x286xf32>
    %12 = arith.addf %7, %11 : vector<16x286xf32>
    %c2 = arith.constant 2 : index
    %c0_9 = arith.constant 0 : index
    %c0_10 = arith.constant 0 : index
    %13 = vector.load %arg1[%c2, %c0_9, %c0_10] : memref<9x16x3xbf16, #tpu.memory_space<vmem>>, vector<1x16x3xbf16>
    %14 = vector.shape_cast %13 : vector<1x16x3xbf16> to vector<16x3xbf16>
    %15 = vector.extract_strided_slice %1 {offsets = [0, 2], sizes = [3, 286], strides = [1, 1]} : vector<3x324xbf16> to vector<3x286xbf16>
    %cst_11 = arith.constant dense<0.000000e+00> : vector<16x286xf32>
    %16 = tpu.matmul %14, %15, %cst_11 {dimension_numbers = #tpu.dot_dimension_numbers<[1], [0], [0], [1], [0, 0, 1, 1], [], []>} : vector<16x3xbf16>, vector<3x286xbf16>, vector<16x286xf32> -> vector<16x286xf32>
    %17 = arith.addf %12, %16 : vector<16x286xf32>
    %c3 = arith.constant 3 : index
    %c0_12 = arith.constant 0 : index
    %c0_13 = arith.constant 0 : index
    %18 = vector.load %arg1[%c3, %c0_12, %c0_13] : memref<9x16x3xbf16, #tpu.memory_space<vmem>>, vector<1x16x3xbf16>
    %19 = vector.shape_cast %18 : vector<1x16x3xbf16> to vector<16x3xbf16>
    %20 = vector.extract_strided_slice %1 {offsets = [0, 18], sizes = [3, 286], strides = [1, 1]} : vector<3x324xbf16> to vector<3x286xbf16>
    %cst_14 = arith.constant dense<0.000000e+00> : vector<16x286xf32>
    %21 = tpu.matmul %19, %20, %cst_14 {dimension_numbers = #tpu.dot_dimension_numbers<[1], [0], [0], [1], [0, 0, 1, 1], [], []>} : vector<16x3xbf16>, vector<3x286xbf16>, vector<16x286xf32> -> vector<16x286xf32>
    %22 = arith.addf %17, %21 : vector<16x286xf32>
    %c4 = arith.constant 4 : index
    %c0_15 = arith.constant 0 : index
    %c0_16 = arith.constant 0 : index
    %23 = vector.load %arg1[%c4, %c0_15, %c0_16] : memref<9x16x3xbf16, #tpu.memory_space<vmem>>, vector<1x16x3xbf16>
    %24 = vector.shape_cast %23 : vector<1x16x3xbf16> to vector<16x3xbf16>
    %25 = vector.extract_strided_slice %1 {offsets = [0, 19], sizes = [3, 286], strides = [1, 1]} : vector<3x324xbf16> to vector<3x286xbf16>
    %cst_17 = arith.constant dense<0.000000e+00> : vector<16x286xf32>
    %26 = tpu.matmul %24, %25, %cst_17 {dimension_numbers = #tpu.dot_dimension_numbers<[1], [0], [0], [1], [0, 0, 1, 1], [], []>} : vector<16x3xbf16>, vector<3x286xbf16>, vector<16x286xf32> -> vector<16x286xf32>
    %27 = arith.addf %22, %26 : vector<16x286xf32>
    %c5 = arith.constant 5 : index
    %c0_18 = arith.constant 0 : index
    %c0_19 = arith.constant 0 : index
    %28 = vector.load %arg1[%c5, %c0_18, %c0_19] : memref<9x16x3xbf16, #tpu.memory_space<vmem>>, vector<1x16x3xbf16>
    %29 = vector.shape_cast %28 : vector<1x16x3xbf16> to vector<16x3xbf16>
    %30 = vector.extract_strided_slice %1 {offsets = [0, 20], sizes = [3, 286], strides = [1, 1]} : vector<3x324xbf16> to vector<3x286xbf16>
    %cst_20 = arith.constant dense<0.000000e+00> : vector<16x286xf32>
    %31 = tpu.matmul %29, %30, %cst_20 {dimension_numbers = #tpu.dot_dimension_numbers<[1], [0], [0], [1], [0, 0, 1, 1], [], []>} : vector<16x3xbf16>, vector<3x286xbf16>, vector<16x286xf32> -> vector<16x286xf32>
    %32 = arith.addf %27, %31 : vector<16x286xf32>
    %c6 = arith.constant 6 : index
    %c0_21 = arith.constant 0 : index
    %c0_22 = arith.constant 0 : index
    %33 = vector.load %arg1[%c6, %c0_21, %c0_22] : memref<9x16x3xbf16, #tpu.memory_space<vmem>>, vector<1x16x3xbf16>
    %34 = vector.shape_cast %33 : vector<1x16x3xbf16> to vector<16x3xbf16>
    %35 = vector.extract_strided_slice %1 {offsets = [0, 36], sizes = [3, 286], strides = [1, 1]} : vector<3x324xbf16> to vector<3x286xbf16>
    %cst_23 = arith.constant dense<0.000000e+00> : vector<16x286xf32>
    %36 = tpu.matmul %34, %35, %cst_23 {dimension_numbers = #tpu.dot_dimension_numbers<[1], [0], [0], [1], [0, 0, 1, 1], [], []>} : vector<16x3xbf16>, vector<3x286xbf16>, vector<16x286xf32> -> vector<16x286xf32>
    %37 = arith.addf %32, %36 : vector<16x286xf32>
    %c7 = arith.constant 7 : index
    %c0_24 = arith.constant 0 : index
    %c0_25 = arith.constant 0 : index
    %38 = vector.load %arg1[%c7, %c0_24, %c0_25] : memref<9x16x3xbf16, #tpu.memory_space<vmem>>, vector<1x16x3xbf16>
    %39 = vector.shape_cast %38 : vector<1x16x3xbf16> to vector<16x3xbf16>
    %40 = vector.extract_strided_slice %1 {offsets = [0, 37], sizes = [3, 286], strides = [1, 1]} : vector<3x324xbf16> to vector<3x286xbf16>
    %cst_26 = arith.constant dense<0.000000e+00> : vector<16x286xf32>
    %41 = tpu.matmul %39, %40, %cst_26 {dimension_numbers = #tpu.dot_dimension_numbers<[1], [0], [0], [1], [0, 0, 1, 1], [], []>} : vector<16x3xbf16>, vector<3x286xbf16>, vector<16x286xf32> -> vector<16x286xf32>
    %42 = arith.addf %37, %41 : vector<16x286xf32>
    %c8 = arith.constant 8 : index
    %c0_27 = arith.constant 0 : index
    %c0_28 = arith.constant 0 : index
    %43 = vector.load %arg1[%c8, %c0_27, %c0_28] : memref<9x16x3xbf16, #tpu.memory_space<vmem>>, vector<1x16x3xbf16>
    %44 = vector.shape_cast %43 : vector<1x16x3xbf16> to vector<16x3xbf16>
    %45 = vector.extract_strided_slice %1 {offsets = [0, 38], sizes = [3, 286], strides = [1, 1]} : vector<3x324xbf16> to vector<3x286xbf16>
    %cst_29 = arith.constant dense<0.000000e+00> : vector<16x286xf32>
    %46 = tpu.matmul %44, %45, %cst_29 {dimension_numbers = #tpu.dot_dimension_numbers<[1], [0], [0], [1], [0, 0, 1, 1], [], []>} : vector<16x3xbf16>, vector<3x286xbf16>, vector<16x286xf32> -> vector<16x286xf32>
    %47 = arith.addf %42, %46 : vector<16x286xf32>
    %c0_30 = arith.constant 0 : index
    %c0_31 = arith.constant 0 : index
    %48 = vector.load %arg2[%c0_30, %c0_31] : memref<16x1xf32, #tpu.memory_space<vmem>>, vector<16x1xf32>
    %49 = vector.broadcast %48 : vector<16x1xf32> to vector<16x286xf32>
    %50 = arith.addf %47, %49 : vector<16x286xf32>
    %cst_32 = arith.constant 0.000000e+00 : f32
    %51 = vector.broadcast %cst_32 : f32 to vector<16x286xf32>
    %52 = arith.maximumf %50, %51 : vector<16x286xf32>
    %c0_33 = arith.constant 0 : index
    %c0_34 = arith.constant 0 : index
    %53 = vector.load %arg3[%c0_33, %c0_34] : memref<1x286xf32, #tpu.memory_space<vmem>>, vector<1x286xf32>
    %54 = vector.broadcast %53 : vector<1x286xf32> to vector<16x286xf32>
    %55 = arith.mulf %52, %54 : vector<16x286xf32>
    %56 = arith.truncf %55 : vector<16x286xf32> to vector<16x286xbf16>
    %cst_35 = arith.constant 0.000000e+00 : bf16
    %57 = vector.broadcast %cst_35 : bf16 to vector<16x19xbf16>
    %58 = tpu.concatenate %57, %56, %57 in 1 : vector<16x19xbf16>, vector<16x286xbf16>, vector<16x19xbf16> -> vector<16x324xbf16>
    %c0_36 = arith.constant 0 : index
    %c0_37 = arith.constant 0 : index
    %c0_38 = arith.constant 0 : index
    %59 = vector.load %arg5[%c0_36, %c0_37, %c0_38] : memref<1x16x324xbf16, #tpu.memory_space<vmem>>, vector<1x16x324xbf16>
    %60 = vector.shape_cast %59 : vector<1x16x324xbf16> to vector<16x324xbf16>
    %61 = vector.shape_cast %58 : vector<16x324xbf16> to vector<1x16x324xbf16>
    tpu.vector_store %arg5[%c0_36, %c0_37, %c0_38], %61 {strides = array<i32>} : memref<1x16x324xbf16, #tpu.memory_space<vmem>>, vector<1x16x324xbf16>,
    %62 = arith.extf %56 : vector<16x286xbf16> to vector<16x286xf32>
    %cst_39 = arith.constant dense<0.000000e+00> : vector<16xf32>
    %63 = vector.multi_reduction <add>, %62, %cst_39 [1] : vector<16x286xf32> to vector<16xf32>
    %64 = vector.shape_cast %63 : vector<16xf32> to vector<16x1xf32>
    %cst_40 = arith.constant 3.906250e-03 : f32
    %65 = vector.broadcast %cst_40 : f32 to vector<16x1xf32>
    %66 = arith.mulf %64, %65 : vector<16x1xf32>
    %67 = arith.mulf %62, %62 : vector<16x286xf32>
    %cst_41 = arith.constant dense<0.000000e+00> : vector<16xf32>
    %68 = vector.multi_reduction <add>, %67, %cst_41 [1] : vector<16x286xf32> to vector<16xf32>
    %69 = vector.shape_cast %68 : vector<16xf32> to vector<16x1xf32>
    %cst_42 = arith.constant 3.906250e-03 : f32
    %70 = vector.broadcast %cst_42 : f32 to vector<16x1xf32>
    %71 = arith.mulf %69, %70 : vector<16x1xf32>
    %72 = arith.mulf %66, %66 : vector<16x1xf32>
    %73 = arith.subf %71, %72 : vector<16x1xf32>
    %cst_43 = arith.constant 0.000000e+00 : f32
    %74 = vector.broadcast %cst_43 : f32 to vector<16x1xf32>
    %75 = arith.maximumf %73, %74 : vector<16x1xf32>
    %76 = tpu.concatenate %66, %75 in 1 : vector<16x1xf32>, vector<16x1xf32> -> vector<16x2xf32>
    %c0_44 = arith.constant 0 : index
    %c0_45 = arith.constant 0 : index
    %c0_46 = arith.constant 0 : index
    %77 = vector.load %arg6[%c0_44, %c0_45, %c0_46] : memref<1x16x2xf32, #tpu.memory_space<vmem>>, vector<1x16x2xf32>
    %78 = vector.shape_cast %77 : vector<1x16x2xf32> to vector<16x2xf32>
    %79 = vector.shape_cast %76 : vector<16x2xf32> to vector<1x16x2xf32>
    tpu.vector_store %arg6[%c0_44, %c0_45, %c0_46], %79 {strides = array<i32>} : memref<1x16x2xf32, #tpu.memory_space<vmem>>, vector<1x16x2xf32>,
    return
  }
  func.func @transform_0(%arg0: i32) -> (i32, i32, i32) {
    %c0_i32 = arith.constant 0 : i32
    %c0_i32_0 = arith.constant 0 : i32
    %c0_i32_1 = arith.constant 0 : i32
    %c0_i32_2 = arith.constant 0 : i32
    return %c0_i32, %c0_i32_0, %c0_i32_1 : i32, i32, i32
  }
  func.func @transform_1(%arg0: i32) -> (i32, i32) {
    %c0_i32 = arith.constant 0 : i32
    %c0_i32_0 = arith.constant 0 : i32
    %c0_i32_1 = arith.constant 0 : i32
    return %c0_i32, %c0_i32_0 : i32, i32
  }
  func.func @transform_2(%arg0: i32) -> (i32, i32) {
    %c0_i32 = arith.constant 0 : i32
    %c0_i32_0 = arith.constant 0 : i32
    %c0_i32_1 = arith.constant 0 : i32
    return %c0_i32, %c0_i32_0 : i32, i32
  }
  func.func @transform_3(%arg0: i32) -> (i32, i32, i32) {
    %c0_i32 = arith.constant 0 : i32
    %c0_i32_0 = arith.constant 0 : i32
    %c0_i32_1 = arith.constant 0 : i32
    return %arg0, %c0_i32, %c0_i32_0 : i32, i32, i32
  }
  func.func @transform_4(%arg0: i32) -> (i32, i32, i32) {
    %c0_i32 = arith.constant 0 : i32
    %c0_i32_0 = arith.constant 0 : i32
    %c0_i32_1 = arith.constant 0 : i32
    return %arg0, %c0_i32, %c0_i32_0 : i32, i32, i32
  }
  func.func @transform_5(%arg0: i32) -> (i32, i32, i32) {
    %c0_i32 = arith.constant 0 : i32
    %c0_i32_0 = arith.constant 0 : i32
    %c0_i32_1 = arith.constant 0 : i32
    return %arg0, %c0_i32, %c0_i32_0 : i32, i32, i32
  }
}

module attributes {stable_mosaic.version = 11 : i64} {
  func.func @kernel(%arg0: i32, %arg1: memref<9x32x16xbf16, #tpu.memory_space<vmem>>, %arg2: memref<32x1xf32, #tpu.memory_space<vmem>>, %arg3: memref<1x78xf32, #tpu.memory_space<vmem>>, %arg4: memref<1x16x100xbf16, #tpu.memory_space<vmem>>, %arg5: memref<1x32x2xf32, #tpu.memory_space<vmem>>) attributes {dimension_semantics = [#tpu.dimension_semantics<parallel>], iteration_bounds = array<i64: 2>, scalar_prefetch = 0 : i64, scratch_operands = 0 : i64, tpu.core_type = #tpu.core_type<tc>, window_params = [{pipeline_mode = #tpu.pipeline_mode<synchronous>, transform_indices = @transform_0, window_bounds = array<i64: 9, 32, 16>}, {pipeline_mode = #tpu.pipeline_mode<synchronous>, transform_indices = @transform_1, window_bounds = array<i64: 32, 1>}, {pipeline_mode = #tpu.pipeline_mode<synchronous>, transform_indices = @transform_2, window_bounds = array<i64: 1, 78>}, {transform_indices = @transform_3, window_bounds = array<i64: 1, 16, 100>}, {transform_indices = @transform_4, window_bounds = array<i64: 1, 32, 2>}]} {
    %c0 = arith.constant 0 : index
    %c0_0 = arith.constant 0 : index
    %c0_1 = arith.constant 0 : index
    %0 = vector.load %arg4[%c0, %c0_0, %c0_1] : memref<1x16x100xbf16, #tpu.memory_space<vmem>>, vector<1x16x100xbf16>
    %1 = vector.shape_cast %0 : vector<1x16x100xbf16> to vector<16x100xbf16>
    %cst = arith.constant 0.000000e+00 : f32
    %2 = vector.broadcast %cst : f32 to vector<32x78xf32>
    %c0_2 = arith.constant 0 : index
    %c0_3 = arith.constant 0 : index
    %c0_4 = arith.constant 0 : index
    %3 = vector.load %arg1[%c0_2, %c0_3, %c0_4] : memref<9x32x16xbf16, #tpu.memory_space<vmem>>, vector<1x32x16xbf16>
    %4 = vector.shape_cast %3 : vector<1x32x16xbf16> to vector<32x16xbf16>
    %5 = vector.extract_strided_slice %1 {offsets = [0, 0], sizes = [16, 78], strides = [1, 1]} : vector<16x100xbf16> to vector<16x78xbf16>
    %cst_5 = arith.constant dense<0.000000e+00> : vector<32x78xf32>
    %6 = tpu.matmul %4, %5, %cst_5 {dimension_numbers = #tpu.dot_dimension_numbers<[1], [0], [0], [1], [0, 0, 1, 1], [], []>} : vector<32x16xbf16>, vector<16x78xbf16>, vector<32x78xf32> -> vector<32x78xf32>
    %7 = arith.addf %2, %6 : vector<32x78xf32>
    %c1 = arith.constant 1 : index
    %c0_6 = arith.constant 0 : index
    %c0_7 = arith.constant 0 : index
    %8 = vector.load %arg1[%c1, %c0_6, %c0_7] : memref<9x32x16xbf16, #tpu.memory_space<vmem>>, vector<1x32x16xbf16>
    %9 = vector.shape_cast %8 : vector<1x32x16xbf16> to vector<32x16xbf16>
    %10 = vector.extract_strided_slice %1 {offsets = [0, 1], sizes = [16, 78], strides = [1, 1]} : vector<16x100xbf16> to vector<16x78xbf16>
    %cst_8 = arith.constant dense<0.000000e+00> : vector<32x78xf32>
    %11 = tpu.matmul %9, %10, %cst_8 {dimension_numbers = #tpu.dot_dimension_numbers<[1], [0], [0], [1], [0, 0, 1, 1], [], []>} : vector<32x16xbf16>, vector<16x78xbf16>, vector<32x78xf32> -> vector<32x78xf32>
    %12 = arith.addf %7, %11 : vector<32x78xf32>
    %c2 = arith.constant 2 : index
    %c0_9 = arith.constant 0 : index
    %c0_10 = arith.constant 0 : index
    %13 = vector.load %arg1[%c2, %c0_9, %c0_10] : memref<9x32x16xbf16, #tpu.memory_space<vmem>>, vector<1x32x16xbf16>
    %14 = vector.shape_cast %13 : vector<1x32x16xbf16> to vector<32x16xbf16>
    %15 = vector.extract_strided_slice %1 {offsets = [0, 2], sizes = [16, 78], strides = [1, 1]} : vector<16x100xbf16> to vector<16x78xbf16>
    %cst_11 = arith.constant dense<0.000000e+00> : vector<32x78xf32>
    %16 = tpu.matmul %14, %15, %cst_11 {dimension_numbers = #tpu.dot_dimension_numbers<[1], [0], [0], [1], [0, 0, 1, 1], [], []>} : vector<32x16xbf16>, vector<16x78xbf16>, vector<32x78xf32> -> vector<32x78xf32>
    %17 = arith.addf %12, %16 : vector<32x78xf32>
    %c3 = arith.constant 3 : index
    %c0_12 = arith.constant 0 : index
    %c0_13 = arith.constant 0 : index
    %18 = vector.load %arg1[%c3, %c0_12, %c0_13] : memref<9x32x16xbf16, #tpu.memory_space<vmem>>, vector<1x32x16xbf16>
    %19 = vector.shape_cast %18 : vector<1x32x16xbf16> to vector<32x16xbf16>
    %20 = vector.extract_strided_slice %1 {offsets = [0, 10], sizes = [16, 78], strides = [1, 1]} : vector<16x100xbf16> to vector<16x78xbf16>
    %cst_14 = arith.constant dense<0.000000e+00> : vector<32x78xf32>
    %21 = tpu.matmul %19, %20, %cst_14 {dimension_numbers = #tpu.dot_dimension_numbers<[1], [0], [0], [1], [0, 0, 1, 1], [], []>} : vector<32x16xbf16>, vector<16x78xbf16>, vector<32x78xf32> -> vector<32x78xf32>
    %22 = arith.addf %17, %21 : vector<32x78xf32>
    %c4 = arith.constant 4 : index
    %c0_15 = arith.constant 0 : index
    %c0_16 = arith.constant 0 : index
    %23 = vector.load %arg1[%c4, %c0_15, %c0_16] : memref<9x32x16xbf16, #tpu.memory_space<vmem>>, vector<1x32x16xbf16>
    %24 = vector.shape_cast %23 : vector<1x32x16xbf16> to vector<32x16xbf16>
    %25 = vector.extract_strided_slice %1 {offsets = [0, 11], sizes = [16, 78], strides = [1, 1]} : vector<16x100xbf16> to vector<16x78xbf16>
    %cst_17 = arith.constant dense<0.000000e+00> : vector<32x78xf32>
    %26 = tpu.matmul %24, %25, %cst_17 {dimension_numbers = #tpu.dot_dimension_numbers<[1], [0], [0], [1], [0, 0, 1, 1], [], []>} : vector<32x16xbf16>, vector<16x78xbf16>, vector<32x78xf32> -> vector<32x78xf32>
    %27 = arith.addf %22, %26 : vector<32x78xf32>
    %c5 = arith.constant 5 : index
    %c0_18 = arith.constant 0 : index
    %c0_19 = arith.constant 0 : index
    %28 = vector.load %arg1[%c5, %c0_18, %c0_19] : memref<9x32x16xbf16, #tpu.memory_space<vmem>>, vector<1x32x16xbf16>
    %29 = vector.shape_cast %28 : vector<1x32x16xbf16> to vector<32x16xbf16>
    %30 = vector.extract_strided_slice %1 {offsets = [0, 12], sizes = [16, 78], strides = [1, 1]} : vector<16x100xbf16> to vector<16x78xbf16>
    %cst_20 = arith.constant dense<0.000000e+00> : vector<32x78xf32>
    %31 = tpu.matmul %29, %30, %cst_20 {dimension_numbers = #tpu.dot_dimension_numbers<[1], [0], [0], [1], [0, 0, 1, 1], [], []>} : vector<32x16xbf16>, vector<16x78xbf16>, vector<32x78xf32> -> vector<32x78xf32>
    %32 = arith.addf %27, %31 : vector<32x78xf32>
    %c6 = arith.constant 6 : index
    %c0_21 = arith.constant 0 : index
    %c0_22 = arith.constant 0 : index
    %33 = vector.load %arg1[%c6, %c0_21, %c0_22] : memref<9x32x16xbf16, #tpu.memory_space<vmem>>, vector<1x32x16xbf16>
    %34 = vector.shape_cast %33 : vector<1x32x16xbf16> to vector<32x16xbf16>
    %35 = vector.extract_strided_slice %1 {offsets = [0, 20], sizes = [16, 78], strides = [1, 1]} : vector<16x100xbf16> to vector<16x78xbf16>
    %cst_23 = arith.constant dense<0.000000e+00> : vector<32x78xf32>
    %36 = tpu.matmul %34, %35, %cst_23 {dimension_numbers = #tpu.dot_dimension_numbers<[1], [0], [0], [1], [0, 0, 1, 1], [], []>} : vector<32x16xbf16>, vector<16x78xbf16>, vector<32x78xf32> -> vector<32x78xf32>
    %37 = arith.addf %32, %36 : vector<32x78xf32>
    %c7 = arith.constant 7 : index
    %c0_24 = arith.constant 0 : index
    %c0_25 = arith.constant 0 : index
    %38 = vector.load %arg1[%c7, %c0_24, %c0_25] : memref<9x32x16xbf16, #tpu.memory_space<vmem>>, vector<1x32x16xbf16>
    %39 = vector.shape_cast %38 : vector<1x32x16xbf16> to vector<32x16xbf16>
    %40 = vector.extract_strided_slice %1 {offsets = [0, 21], sizes = [16, 78], strides = [1, 1]} : vector<16x100xbf16> to vector<16x78xbf16>
    %cst_26 = arith.constant dense<0.000000e+00> : vector<32x78xf32>
    %41 = tpu.matmul %39, %40, %cst_26 {dimension_numbers = #tpu.dot_dimension_numbers<[1], [0], [0], [1], [0, 0, 1, 1], [], []>} : vector<32x16xbf16>, vector<16x78xbf16>, vector<32x78xf32> -> vector<32x78xf32>
    %42 = arith.addf %37, %41 : vector<32x78xf32>
    %c8 = arith.constant 8 : index
    %c0_27 = arith.constant 0 : index
    %c0_28 = arith.constant 0 : index
    %43 = vector.load %arg1[%c8, %c0_27, %c0_28] : memref<9x32x16xbf16, #tpu.memory_space<vmem>>, vector<1x32x16xbf16>
    %44 = vector.shape_cast %43 : vector<1x32x16xbf16> to vector<32x16xbf16>
    %45 = vector.extract_strided_slice %1 {offsets = [0, 22], sizes = [16, 78], strides = [1, 1]} : vector<16x100xbf16> to vector<16x78xbf16>
    %cst_29 = arith.constant dense<0.000000e+00> : vector<32x78xf32>
    %46 = tpu.matmul %44, %45, %cst_29 {dimension_numbers = #tpu.dot_dimension_numbers<[1], [0], [0], [1], [0, 0, 1, 1], [], []>} : vector<32x16xbf16>, vector<16x78xbf16>, vector<32x78xf32> -> vector<32x78xf32>
    %47 = arith.addf %42, %46 : vector<32x78xf32>
    %c0_30 = arith.constant 0 : index
    %c0_31 = arith.constant 0 : index
    %48 = vector.load %arg2[%c0_30, %c0_31] : memref<32x1xf32, #tpu.memory_space<vmem>>, vector<32x1xf32>
    %49 = vector.broadcast %48 : vector<32x1xf32> to vector<32x78xf32>
    %50 = arith.addf %47, %49 : vector<32x78xf32>
    %cst_32 = arith.constant 0.000000e+00 : f32
    %51 = vector.broadcast %cst_32 : f32 to vector<32x78xf32>
    %52 = arith.maximumf %50, %51 : vector<32x78xf32>
    %c0_33 = arith.constant 0 : index
    %c0_34 = arith.constant 0 : index
    %53 = vector.load %arg3[%c0_33, %c0_34] : memref<1x78xf32, #tpu.memory_space<vmem>>, vector<1x78xf32>
    %54 = vector.broadcast %53 : vector<1x78xf32> to vector<32x78xf32>
    %55 = arith.mulf %52, %54 : vector<32x78xf32>
    %56 = arith.truncf %55 : vector<32x78xf32> to vector<32x78xbf16>
    %57 = arith.extf %56 : vector<32x78xbf16> to vector<32x78xf32>
    %cst_35 = arith.constant dense<0.000000e+00> : vector<32xf32>
    %58 = vector.multi_reduction <add>, %57, %cst_35 [1] : vector<32x78xf32> to vector<32xf32>
    %59 = vector.shape_cast %58 : vector<32xf32> to vector<32x1xf32>
    %cst_36 = arith.constant 1.562500e-02 : f32
    %60 = vector.broadcast %cst_36 : f32 to vector<32x1xf32>
    %61 = arith.mulf %59, %60 : vector<32x1xf32>
    %62 = arith.mulf %57, %57 : vector<32x78xf32>
    %cst_37 = arith.constant dense<0.000000e+00> : vector<32xf32>
    %63 = vector.multi_reduction <add>, %62, %cst_37 [1] : vector<32x78xf32> to vector<32xf32>
    %64 = vector.shape_cast %63 : vector<32xf32> to vector<32x1xf32>
    %cst_38 = arith.constant 1.562500e-02 : f32
    %65 = vector.broadcast %cst_38 : f32 to vector<32x1xf32>
    %66 = arith.mulf %64, %65 : vector<32x1xf32>
    %67 = arith.mulf %61, %61 : vector<32x1xf32>
    %68 = arith.subf %66, %67 : vector<32x1xf32>
    %cst_39 = arith.constant 0.000000e+00 : f32
    %69 = vector.broadcast %cst_39 : f32 to vector<32x1xf32>
    %70 = arith.maximumf %68, %69 : vector<32x1xf32>
    %71 = tpu.concatenate %61, %70 in 1 : vector<32x1xf32>, vector<32x1xf32> -> vector<32x2xf32>
    %c0_40 = arith.constant 0 : index
    %c0_41 = arith.constant 0 : index
    %c0_42 = arith.constant 0 : index
    %72 = vector.load %arg5[%c0_40, %c0_41, %c0_42] : memref<1x32x2xf32, #tpu.memory_space<vmem>>, vector<1x32x2xf32>
    %73 = vector.shape_cast %72 : vector<1x32x2xf32> to vector<32x2xf32>
    %74 = vector.shape_cast %71 : vector<32x2xf32> to vector<1x32x2xf32>
    tpu.vector_store %arg5[%c0_40, %c0_41, %c0_42], %74 {strides = array<i32>} : memref<1x32x2xf32, #tpu.memory_space<vmem>>, vector<1x32x2xf32>,
    return
  }
  func.func @transform_0(%arg0: i32) -> (i32, i32, i32) {
    %c0_i32 = arith.constant 0 : i32
    %c0_i32_0 = arith.constant 0 : i32
    %c0_i32_1 = arith.constant 0 : i32
    %c0_i32_2 = arith.constant 0 : i32
    return %c0_i32, %c0_i32_0, %c0_i32_1 : i32, i32, i32
  }
  func.func @transform_1(%arg0: i32) -> (i32, i32) {
    %c0_i32 = arith.constant 0 : i32
    %c0_i32_0 = arith.constant 0 : i32
    %c0_i32_1 = arith.constant 0 : i32
    return %c0_i32, %c0_i32_0 : i32, i32
  }
  func.func @transform_2(%arg0: i32) -> (i32, i32) {
    %c0_i32 = arith.constant 0 : i32
    %c0_i32_0 = arith.constant 0 : i32
    %c0_i32_1 = arith.constant 0 : i32
    return %c0_i32, %c0_i32_0 : i32, i32
  }
  func.func @transform_3(%arg0: i32) -> (i32, i32, i32) {
    %c0_i32 = arith.constant 0 : i32
    %c0_i32_0 = arith.constant 0 : i32
    %c0_i32_1 = arith.constant 0 : i32
    return %arg0, %c0_i32, %c0_i32_0 : i32, i32, i32
  }
  func.func @transform_4(%arg0: i32) -> (i32, i32, i32) {
    %c0_i32 = arith.constant 0 : i32
    %c0_i32_0 = arith.constant 0 : i32
    %c0_i32_1 = arith.constant 0 : i32
    return %arg0, %c0_i32, %c0_i32_0 : i32, i32, i32
  }
}

</mosaic_0001>

<bundles_post_ra>
// kernel: fwd.4
= control target key start
LH: loop header
LB: loop body
LE: loop exit
PB: predicated region body
PF: predicated region fallthrough
CT: control target
= control target key end

     0   :  { %s1569_s15 = smov 0   ;;  %s1706_s0 = inlined_call_operand.vmem [shape: bf16[9,16,16], index: 0, kind: input, shape index: {}]   ;;  %s1707_s1 = inlined_call_operand.vmem [shape: f32[16,1], index: 1, kind: input, shape index: {}]   ;;  %s1708_s2 = inlined_call_operand.vmem [shape: f32[1,286], index: 2, kind: input, shape index: {}]   ;;  %s1709_s3 = inlined_call_operand.vmem [shape: bf16[2,16,324], index: 3, kind: input, shape index: {}]   ;;  %s1710_s4 = inlined_call_operand.vmem [shape: bf16[2,16,324], index: 4, kind: output, shape index: {}]  }
   0x1 LB: > { %s1357_s16 = sadd.s32 4294967295, %s1530_s15   ;;  %p1361_p0 = scmp.ge.s32.totalorder %s1530_s15, 1  ;;  %s1530_s15 = sphi %s1569_s15, %s14_s15  }
   0x2   : > { %p162_p1 = scmp.lt.s32.totalorder %s1530_s15, 3 }
   0x4   : > { %p163_p2 = pnand %p1361_p0, %p162_p1 }
   0x5   : > { %p188_p3 = scmp.lt.s32.totalorder (!%p163_p2), %s1357_s16, 1  ;;  %s1535_s21 = smov (!%p163_p2), 127  }
   0x6   : > { %166 = sbr.rel (%p163_p2) target bundleno = 536 (0x218), region = 36  ;;  %s1536_s22 = smov (!%p163_p2), 126  }
   0x7   : > { %s1537_s23 = smov (!%p163_p2), 110   ;;  %s1538_s24 = smov (!%p163_p2), 109  }
   0x8   : > { %s1539_s25 = smov (!%p163_p2), 108   ;;  %s1540_s26 = smov (!%p163_p2), 92  }
   0x9   : > { %s1541_s27 = smov (!%p163_p2), 91   ;;  %s1542_s28 = smov (!%p163_p2), 90  }
   0xa   : > { %s1543_s30 = smov (!%p163_p2), 19  }
   0xb   : > { %v1532_v0 = vmov 0.0   ;;  %s1712_s16 = smov (!%p188_p3, %s1357_s16), 1  ;;  %vm1533_vm0 = vmmov 0   ;;  %v1534_v1 = vmov 0   ;;  %v1212_v5 = vld [vmem:[%s1707_s1] sm:$0xff]  ;;  %v1213_v6 = vld [vmem:[%s1707_s1 + $0x8] sm:$0xff] }
   0xc   : > { %1434 = vmatprep.subr.bf16.mxu1 %v1532_v0  ;;  %1436 = vmatprep.mubr.msk.bf16.mxu1 %vm1533_vm0, %v1532_v0  ;;  %s1488_s17 = smul.u32 24, %s1712_s16  ;;  %vm232_vm1 = vcmask 1039360   ;;  %v1515_v10 = vld [vmem:[%s1706_s0 + $0x8] sm:$0xff]   ;;  %vm238_vm2 = vcmask 130048   ;;  %vm435_vm3 = vcmask 1031168   ;;  %v1516_v17 = vld [vmem:[%s1706_s0] sm:$0xff]  }
   0xd   : > { %274 = vmatprep.mubr.bf16.mxu0 %v1534_v1  ;;  %1509 = vset.pattern.permute.xlu0 %v1534_v1  ;;  %vm548_vm4 = vcmask 900096   ;;  %v1517_v23 = vld [vmem:[%s1706_s0 + $0x10] sm:$0xff]   ;;  %vm661_vm5 = vcmask 891904   ;;  %v1518_v29 = vld [vmem:[%s1706_s0 + $0x18] sm:$0xff]   ;;  %vm774_vm6 = vcmask 883712   ;;  %v1519_v35 = vld [vmem:[%s1706_s0 + $0x20] sm:$0xff]  }
   0xe   : > { %1510 = vset.pattern.permute.xlu1 %v1534_v1  ;;  %s192_s20 = scalar_lea.vmem %s1709_s3, %s1488_s17  ;;  %vm887_vm7 = vcmask 752640   ;;  %v1520_v41 = vld [vmem:[%s1706_s0 + $0x28] sm:$0xff]   ;;  %vm1000_vm8 = vcmask 744448   ;;  %v1521_v47 = vld [vmem:[%s1706_s0 + $0x30] sm:$0xff]   ;;  %vm1113_vm9 = vcmask 736256   ;;  %v1522_v52 = vld [vmem:[%s1706_s0 + $0x38] sm:$0xff]   ;;  %s197_s7 = scalar_lea.vmem %s1710_s4, %s1488_s17 }
   0xf   : > { %v1511_v2 = vld [vmem:[%s192_s20 + $0x4] ss:$12 sps:$4 sm:$0xff]   ;;  %v1513_v3 = vld [vmem:[%s192_s20] ss:$12 sps:$4 sm:$0xff]   ;;  %v1514_v4 = vld [vmem:[%s192_s20 + $0x8] ss:$12 sps:$4 sm:$0xff]  }
  0x10   : > { %228 = vrot.lane.b32.xlu0 %v1511_v2, %s1535_s21  ;;  %226 = vrot.lane.b32.xlu1 %v1513_v3, %s1535_s21  ;;  %v1523_v55 = vld [vmem:[%s1706_s0 + $0x40] sm:$0xff]   ;;  %vm1271_vm10 = vcmask 154624   ;;  %vm1278_vm11 = vcmask 400384   ;;  %vm1298_vm12 = vcmask 551936  }
  0x14   : > { %230 = vrot.lane.b32.xlu0 %v1514_v4, %s1535_s21  ;;  %431 = vrot.lane.b32.xlu1 %v1511_v2, %s1536_s22 }
  0x18   : > { %433 = vrot.lane.b32.xlu0 %v1514_v4, %s1536_s22  ;;  %429 = vrot.lane.b32.xlu1 %v1513_v3, %s1536_s22 }
  0x1c   : > { %544 = vrot.lane.b32.xlu0 %v1511_v2, %s1537_s23  ;;  %546 = vrot.lane.b32.xlu1 %v1514_v4, %s1537_s23 }
  0x20   : > { %542 = vrot.lane.b32.xlu0 %v1513_v3, %s1537_s23  ;;  %657 = vrot.lane.b32.xlu1 %v1511_v2, %s1538_s24 }
  0x24   : > { %659 = vrot.lane.b32.xlu0 %v1514_v4, %s1538_s24  ;;  %655 = vrot.lane.b32.xlu1 %v1513_v3, %s1538_s24 }
  0x28   : > { %770 = vrot.lane.b32.xlu0 %v1511_v2, %s1539_s25  ;;  %772 = vrot.lane.b32.xlu1 %v1514_v4, %s1539_s25 }
  0x2c   : > { %768 = vrot.lane.b32.xlu0 %v1513_v3, %s1539_s25  ;;  %883 = vrot.lane.b32.xlu1 %v1511_v2, %s1540_s26 }
  0x30   : > { %885 = vrot.lane.b32.xlu0 %v1514_v4, %s1540_s26  ;;  %881 = vrot.lane.b32.xlu1 %v1513_v3, %s1540_s26 }
  0x34   : > { %996 = vrot.lane.b32.xlu0 %v1511_v2, %s1541_s27  ;;  %998 = vrot.lane.b32.xlu1 %v1514_v4, %s1541_s27 }
  0x38   : > { %994 = vrot.lane.b32.xlu0 %v1513_v3, %s1541_s27  ;;  %1109 = vrot.lane.b32.xlu1 %v1511_v2, %s1542_s28 }
  0x3c   : > { %1111 = vrot.lane.b32.xlu0 %v1514_v4, %s1542_s28  ;;  %1107 = vrot.lane.b32.xlu1 %v1513_v3, %s1542_s28 }
  0x40   : > { %1216 = vperm.xlu0 %1509, %v1212_v5   ;;  %1221 = vperm.xlu1 %1510, %v1213_v6  }
  0x82   : > { %v229_v7 = vpop.permute.xlu0 %228  ;;  %v227_v8 = vpop.permute.xlu1 %226 }
  0x83   : > { %v233_v13 = vsel %vm232_vm1, %v227_v8, %v229_v7 }
  0x86   : > { %v231_v9 = vpop.permute.xlu0 %230  ;;  %v432_v12 = vpop.permute.xlu1 %431 }
  0x87   : > { %1435 = vmatpush3.bf16.msra.mxu1 %v231_v9  ;;  %v234_v11 = vsel %vm232_vm1, %v229_v7, %v231_v9 }
  0x88   : > { %256 = vmatprep.subr.bf16.mxu0 %v234_v11  ;;  %1440 = vmatprep.subr.bf16.mxu1 %v1532_v0 }
  0x89   : > { %257 = vmatpush1.bf16.msra.mxu0 %v233_v13 }
  0x8a   : > { %1437 = vmatmul.mubr.msk.bf16.vlgmr.msra.gmra.mxu1 %vm238_vm2, %v1515_v10  ;;  %351 = vmatprep.subr.bf16.mxu0 %v1511_v2  ;;  %v434_v14 = vpop.permute.xlu0 %433  ;;  %v430_v16 = vpop.permute.xlu1 %429 }
  0x8b   : > { %1441 = vmatpush3.bf16.msra.mxu1 %v1514_v4  ;;  %1442 = vmatprep.mubr.msk.bf16.mxu1 %vm1533_vm0, %v1532_v0  ;;  %v437_v15 = vsel %vm435_vm3, %v432_v12, %v434_v14  ;;  %v436_v20 = vsel %vm435_vm3, %v430_v16, %v432_v12 }
  0x8c   : > { %1370 = vmatmul.mubr.msk.bf16.vlgmr.msra.gmra.mxu0 %vm238_vm2, %v1515_v10  ;;  %1446 = vmatprep.subr.bf16.mxu1 %v1532_v0 }
  0x8d   : > { %352 = vmatpush1.bf16.msra.mxu0 %v1513_v3  ;;  %369 = vmatprep.mubr.bf16.mxu0 %v1534_v1 }
  0x8e   : > { %458 = vmatprep.subr.bf16.mxu0 %v437_v15  ;;  %v545_v18 = vpop.permute.xlu0 %544  ;;  %v547_v19 = vpop.permute.xlu1 %546 }
  0x8f   : > { %v550_v21 = vsel %vm548_vm4, %v545_v18, %v547_v19 }
  0x92   : > { %1443 = vmatmul.mubr.msk.bf16.vlgmr.msra.gmra.mxu1 %vm238_vm2, %v1516_v17  ;;  %v543_v22 = vpop.permute.xlu0 %542  ;;  %v658_v24 = vpop.permute.xlu1 %657 }
  0x93   : > { %1447 = vmatpush3.bf16.msra.mxu1 %v434_v14  ;;  %1448 = vmatprep.mubr.msk.bf16.mxu1 %vm1533_vm0, %v1532_v0  ;;  %v549_v26 = vsel %vm548_vm4, %v543_v22, %v545_v18 }
  0x94   : > { %1373 = vmatmul.mubr.msk.bf16.vlgmr.msra.gmra.mxu0 %vm238_vm2, %v1516_v17  ;;  %1452 = vmatprep.subr.bf16.mxu1 %v1532_v0 }
  0x95   : > { %459 = vmatpush1.bf16.msra.mxu0 %v436_v20  ;;  %476 = vmatprep.mubr.bf16.mxu0 %v1534_v1 }
  0x96   : > { %571 = vmatprep.subr.bf16.mxu0 %v550_v21  ;;  %v660_v25 = vpop.permute.xlu0 %659  ;;  %v656_v28 = vpop.permute.xlu1 %655 }
  0x97   : > { %v663_v27 = vsel %vm661_vm5, %v658_v24, %v660_v25  ;;  %v662_v32 = vsel %vm661_vm5, %v656_v28, %v658_v24 }
  0x9a   : > { %1449 = vmatmul.mubr.msk.bf16.vlgmr.msra.gmra.mxu1 %vm238_vm2, %v1517_v23  ;;  %v771_v30 = vpop.permute.xlu0 %770  ;;  %v773_v31 = vpop.permute.xlu1 %772 }
  0x9b   : > { %1453 = vmatpush3.bf16.msra.mxu1 %v547_v19  ;;  %1454 = vmatprep.mubr.msk.bf16.mxu1 %vm1533_vm0, %v1532_v0  ;;  %v776_v33 = vsel %vm774_vm6, %v771_v30, %v773_v31 }
  0x9c   : > { %1378 = vmatmul.mubr.msk.bf16.vlgmr.msra.gmra.mxu0 %vm238_vm2, %v1517_v23  ;;  %1458 = vmatprep.subr.bf16.mxu1 %v1532_v0 }
  0x9d   : > { %572 = vmatpush1.bf16.msra.mxu0 %v549_v26  ;;  %589 = vmatprep.mubr.bf16.mxu0 %v1534_v1 }
  0x9e   : > { %684 = vmatprep.subr.bf16.mxu0 %v663_v27  ;;  %v769_v34 = vpop.permute.xlu0 %768  ;;  %v884_v36 = vpop.permute.xlu1 %883 }
  0x9f   : > { %v775_v38 = vsel %vm774_vm6, %v769_v34, %v771_v30 }
  0xa2   : > { %1455 = vmatmul.mubr.msk.bf16.vlgmr.msra.gmra.mxu1 %vm238_vm2, %v1518_v29  ;;  %v886_v37 = vpop.permute.xlu0 %885  ;;  %v882_v40 = vpop.permute.xlu1 %881 }
  0xa3   : > { %1459 = vmatpush3.bf16.msra.mxu1 %v660_v25  ;;  %1460 = vmatprep.mubr.msk.bf16.mxu1 %vm1533_vm0, %v1532_v0  ;;  %v889_v39 = vsel %vm887_vm7, %v884_v36, %v886_v37  ;;  %v888_v44 = vsel %vm887_vm7, %v882_v40, %v884_v36 }
  0xa4   : > { %1383 = vmatmul.mubr.msk.bf16.vlgmr.msra.gmra.mxu0 %vm238_vm2, %v1518_v29  ;;  %1464 = vmatprep.subr.bf16.mxu1 %v1532_v0 }
  0xa5   : > { %685 = vmatpush1.bf16.msra.mxu0 %v662_v32  ;;  %702 = vmatprep.mubr.bf16.mxu0 %v1534_v1 }
  0xa6   : > { %797 = vmatprep.subr.bf16.mxu0 %v776_v33  ;;  %v997_v42 = vpop.permute.xlu0 %996  ;;  %v999_v43 = vpop.permute.xlu1 %998 }
  0xa7   : > { %v1002_v45 = vsel %vm1000_vm8, %v997_v42, %v999_v43 }
  0xaa   : > { %1461 = vmatmul.mubr.msk.bf16.vlgmr.msra.gmra.mxu1 %vm238_vm2, %v1519_v35  ;;  %v995_v46 = vpop.permute.xlu0 %994  ;;  %v1110_v49 = vpop.permute.xlu1 %1109 }
  0xab   : > { %1465 = vmatpush3.bf16.msra.mxu1 %v773_v31  ;;  %1466 = vmatprep.mubr.msk.bf16.mxu1 %vm1533_vm0, %v1532_v0  ;;  %v1001_v50 = vsel %vm1000_vm8, %v995_v46, %v997_v42 }
  0xac   : > { %1388 = vmatmul.mubr.msk.bf16.vlgmr.msra.gmra.mxu0 %vm238_vm2, %v1519_v35  ;;  %1470 = vmatprep.subr.bf16.mxu1 %v1532_v0 }
  0xad   : > { %798 = vmatpush1.bf16.msra.mxu0 %v775_v38  ;;  %815 = vmatprep.mubr.bf16.mxu0 %v1534_v1 }
  0xae   : > { %910 = vmatprep.subr.bf16.mxu0 %v889_v39  ;;  %v1112_v48 = vpop.permute.xlu0 %1111  ;;  %v1108_v53 = vpop.permute.xlu1 %1107 }
  0xaf   : > { %v1115_v51 = vsel %vm1113_vm9, %v1110_v49, %v1112_v48  ;;  %v1114_v54 = vsel %vm1113_vm9, %v1108_v53, %v1110_v49 }
  0xb2   : > { %1467 = vmatmul.mubr.msk.bf16.vlgmr.msra.gmra.mxu1 %vm238_vm2, %v1520_v41 }
  0xb3   : > { %1471 = vmatpush3.bf16.msra.mxu1 %v886_v37  ;;  %1472 = vmatprep.mubr.msk.bf16.mxu1 %vm1533_vm0, %v1532_v0 }
  0xb4   : > { %1393 = vmatmul.mubr.msk.bf16.vlgmr.msra.gmra.mxu0 %vm238_vm2, %v1520_v41  ;;  %1476 = vmatprep.subr.bf16.mxu1 %v1532_v0 }
  0xb5   : > { %911 = vmatpush1.bf16.msra.mxu0 %v888_v44  ;;  %928 = vmatprep.mubr.bf16.mxu0 %v1534_v1 }
  0xb6   : > { %1023 = vmatprep.subr.bf16.mxu0 %v1002_v45 }
  0xba   : > { %1473 = vmatmul.mubr.msk.bf16.vlgmr.msra.gmra.mxu1 %vm238_vm2, %v1521_v47 }
  0xbb   : > { %1477 = vmatpush3.bf16.msra.mxu1 %v999_v43  ;;  %1478 = vmatprep.mubr.msk.bf16.mxu1 %vm1533_vm0, %v1532_v0 }
  0xbc   : > { %1398 = vmatmul.mubr.msk.bf16.vlgmr.msra.gmra.mxu0 %vm238_vm2, %v1521_v47  ;;  %1482 = vmatprep.subr.bf16.mxu1 %v1532_v0 }
  0xbd   : > { %1024 = vmatpush1.bf16.msra.mxu0 %v1001_v50  ;;  %1041 = vmatprep.mubr.bf16.mxu0 %v1534_v1 }
  0xbe   : > { %1136 = vmatprep.subr.bf16.mxu0 %v1115_v51 }
  0xc2   : > { %1479 = vmatmul.mubr.msk.bf16.vlgmr.msra.gmra.mxu1 %vm238_vm2, %v1522_v52 }
  0xc3   : > { %1483 = vmatpush3.bf16.msra.mxu1 %v1112_v48  ;;  %1484 = vmatprep.mubr.msk.bf16.mxu1 %vm1533_vm0, %v1532_v0 }
  0xc4   : > { %1403 = vmatmul.mubr.msk.bf16.vlgmr.msra.gmra.mxu0 %vm238_vm2, %v1522_v52 }
  0xc5   : > { %1137 = vmatpush1.bf16.msra.mxu0 %v1114_v54  ;;  %1154 = vmatprep.mubr.bf16.mxu0 %v1534_v1 }
  0xca   : > { %1485 = vmatmul.mubr.msk.bf16.vlgmr.msra.gmra.mxu1 %vm238_vm2, %v1523_v55 }
  0xcc   : > { %1408 = vmatmul.mubr.msk.bf16.vlgmr.msra.gmra.mxu0 %vm238_vm2, %v1523_v55 }
 0x14a   : > { %v319_v56 = vpop.f32.mrf.mxu1 }
 0x14c   : > { %v1686_v57 = vpop.f32.mrf.mxu0  ;;  %v1438_v58 = vpop.f32.mrf.mxu1 }
 0x14e   : > { %v278_v59 = vpop.f32.mrf.mxu0  ;;  %v322_v60 = vpop.f32.mrf.mxu1 }
 0x150   : > { %v280_v61 = vpop.f32.mrf.mxu0  ;;  %v1439_v62 = vpop.f32.mrf.mxu1 }
 0x152   : > { %v1688_v63 = vpop.f32.mrf.mxu0  ;;  %v414_v0 = vpop.f32.mrf.mxu1 }
 0x153   : > { %v415_v43 = vadd.f32 %v414_v0, %v319_v56 }
 0x154   : > { %v371_v1 = vpop.f32.mrf.mxu0  ;;  %v1444_v2 = vpop.f32.mrf.mxu1 }
 0x155   : > { %v372_v2 = vadd.f32 %v371_v1, %v1686_v57 }
 0x156   : > { %v373_v3 = vpop.f32.mrf.mxu0  ;;  %v417_v4 = vpop.f32.mrf.mxu1 }
 0x157   : > { %v374_v49 = vadd.f32 %v373_v3, %v278_v59  ;;  %v418_v50 = vadd.f32 %v417_v4, %v322_v60 }
 0x158   : > { %v375_v5 = vpop.f32.mrf.mxu0  ;;  %v1445_v6 = vpop.f32.mrf.mxu1 }
 0x159   : > { %v376_v54 = vadd.f32 %v375_v5, %v280_v61 }
 0x15a   : > { %v377_v7 = vpop.f32.mrf.mxu0  ;;  %v521_v8 = vpop.f32.mrf.mxu1 }
 0x15b   : > { %v530_v46 = vadd.f32 %v521_v8, %v415_v43 }
 0x15c   : > { %v478_v9 = vpop.f32.mrf.mxu0  ;;  %v1450_v10 = vpop.f32.mrf.mxu1 }
 0x15d   : > { %v528_v59 = vadd.f32 %v478_v9, %v372_v2 }
 0x15e   : > { %v480_v11 = vpop.f32.mrf.mxu0  ;;  %v524_v12 = vpop.f32.mrf.mxu1 }
 0x15f   : > { %v529_v55 = vadd.f32 %v480_v11, %v374_v49  ;;  %v533_v58 = vadd.f32 %v524_v12, %v418_v50 }
 0x160   : > { %v482_v13 = vpop.f32.mrf.mxu0  ;;  %v1451_v14 = vpop.f32.mrf.mxu1 }
 0x161   : > { %v1238_v14 = vlaneseq  ;;  %v531_v56 = vadd.f32 %v482_v13, %v376_v54 }
 0x162   : > { %v484_v15 = vpop.f32.mrf.mxu0  ;;  %v634_v16 = vpop.f32.mrf.mxu1 }
 0x163   : > { %v643_v51 = vadd.f32 %v634_v16, %v530_v46  ;;  %v1239_v1 = vshrl.u32 %v1238_v14, 7 }
 0x164   : > { %v591_v17 = vpop.f32.mrf.mxu0  ;;  %v1456_v18 = vpop.f32.mrf.mxu1 }
 0x165   : > { %v641_v12 = vadd.f32 %v591_v17, %v528_v59  ;;  %v1244_v2 = vsub.s32 1, %v1239_v1 }
 0x166   : > { %v593_v19 = vpop.f32.mrf.mxu0  ;;  %v637_v20 = vpop.f32.mrf.mxu1 }
 0x167   : > { %v642_v0 = vadd.f32 %v593_v19, %v529_v55  ;;  %v646_v18 = vadd.f32 %v637_v20, %v533_v58  ;;  %v1217_v20 = vpop.permute.xlu0 %1216 }
 0x168   : > { %v595_v21 = vpop.f32.mrf.mxu0  ;;  %v1457_v22 = vpop.f32.mrf.mxu1 }
 0x169   : > { %v378_v22 = vadd.f32 %v377_v7, %v1688_v63  ;;  %v644_v4 = vadd.f32 %v595_v21, %v531_v56 }
 0x16a   : > { %v597_v23 = vpop.f32.mrf.mxu0  ;;  %v747_v24 = vpop.f32.mrf.mxu1 }
 0x16b   : > { %v756_v62 = vadd.f32 %v747_v24, %v643_v51  ;;  %v532_v11 = vadd.f32 %v484_v15, %v378_v22 }
 0x16c   : > { %v704_v25 = vpop.f32.mrf.mxu0  ;;  %v1462_v26 = vpop.f32.mrf.mxu1 }
 0x16e   : > { %v706_v27 = vpop.f32.mrf.mxu0  ;;  %v750_v28 = vpop.f32.mrf.mxu1 }
 0x16f   : > { %v755_v16 = vadd.f32 %v706_v27, %v642_v0  ;;  %v759_v61 = vadd.f32 %v750_v28, %v646_v18  ;;  %v1240_v18 = vsub.s32 0, %v1239_v1 }
 0x170   : > { %v708_v29 = vpop.f32.mrf.mxu0  ;;  %v1463_v30 = vpop.f32.mrf.mxu1 }
 0x171   : > { %v757_v26 = vadd.f32 %v708_v29, %v644_v4 }
 0x172   : > { %v710_v31 = vpop.f32.mrf.mxu0  ;;  %v860_v32 = vpop.f32.mrf.mxu1 }
 0x173   : > { %v869_v8 = vadd.f32 %v860_v32, %v756_v62  ;;  %v645_v32 = vadd.f32 %v597_v23, %v532_v11 }
 0x174   : > { %v817_v33 = vpop.f32.mrf.mxu0  ;;  %v1468_v34 = vpop.f32.mrf.mxu1 }
 0x175   : > { %v754_v34 = vadd.f32 %v704_v25, %v641_v12  ;;  %v758_v28 = vadd.f32 %v710_v31, %v645_v32  ;;  %v1236_v25 = vld [vmem:[%s1708_s2] sm:$0x7] }
 0x176   : > { %v819_v35 = vpop.f32.mrf.mxu0  ;;  %v863_v36 = vpop.f32.mrf.mxu1 }
 0x177   : > { %v868_v30 = vadd.f32 %v819_v35, %v755_v16  ;;  %v872_v13 = vadd.f32 %v863_v36, %v759_v61  ;;  %v1222_v36 = vpop.permute.xlu1 %1221 }
 0x178   : > { %v821_v37 = vpop.f32.mrf.mxu0  ;;  %v1469_v38 = vpop.f32.mrf.mxu1 }
 0x179   : > { %v870_v9 = vadd.f32 %v821_v37, %v757_v26 }
 0x17a   : > { %v1690_v39 = vpop.f32.mrf.mxu0  ;;  %v973_v40 = vpop.f32.mrf.mxu1 }
 0x17b   : > { %v982_v5 = vadd.f32 %v973_v40, %v869_v8  ;;  %v867_v40 = vadd.f32 %v817_v33, %v754_v34 }
 0x17c   : > { %v930_v41 = vpop.f32.mrf.mxu0  ;;  %v1474_v42 = vpop.f32.mrf.mxu1 }
 0x17d   : > { %v1248_v42 = vsub.s32 2, %v1239_v1  ;;  %v980_v23 = vadd.f32 %v930_v41, %v867_v40 }
 0x17e   : > { %v932_v44 = vpop.f32.mrf.mxu0  ;;  %v976_v45 = vpop.f32.mrf.mxu1 }
 0x17f   : > { %v981_v38 = vadd.f32 %v932_v44, %v868_v30  ;;  %v985_v21 = vadd.f32 %v976_v45, %v872_v13  ;;  %v1249_v58 = vrot.slane %v1236_v25, %v1248_v42 }
 0x180   : > { %v934_v47 = vpop.f32.mrf.mxu0  ;;  %v1475_v48 = vpop.f32.mrf.mxu1 }
 0x181   : > { %v983_v43 = vadd.f32 %v934_v47, %v870_v9  ;;  %v871_v48 = vadd.f32 %v1690_v39, %v758_v28 }
 0x182   : > { %v936_v52 = vpop.f32.mrf.mxu0  ;;  %v1086_v53 = vpop.f32.mrf.mxu1 }
 0x183   : > { %v1095_v19 = vadd.f32 %v1086_v53, %v982_v5  ;;  %v984_v49 = vadd.f32 %v936_v52, %v871_v48  ;;  %v1241_v5 = vrot.slane %v1236_v25, %v1240_v18 }
 0x184   : > { %v1043_v6 = vpop.f32.mrf.mxu0  ;;  %v1480_v10 = vpop.f32.mrf.mxu1 }
 0x185   : > { %v1093_v50 = vadd.f32 %v1043_v6, %v980_v23  ;;  %v1245_v6 = vrot.slane %v1236_v25, %v1244_v2 }
 0x186   : > { %v1045_v60 = vpop.f32.mrf.mxu0  ;;  %v1089_v3 = vpop.f32.mrf.mxu1 }
 0x187   : > { %v1094_v46 = vadd.f32 %v1045_v60, %v981_v38  ;;  %v1098_v29 = vadd.f32 %v1089_v3, %v985_v21 }
 0x188   : > { %v1047_v24 = vpop.f32.mrf.mxu0  ;;  %v1481_v57 = vpop.f32.mrf.mxu1 }
 0x189   : > { %v1096_v45 = vadd.f32 %v1047_v24, %v983_v43 }
 0x18a   : > { %v1049_v63 = vpop.f32.mrf.mxu0  ;;  %v1199_v7 = vpop.f32.mrf.mxu1 }
 0x18b   : > { %v1208_v27 = vadd.f32 %v1199_v7, %v1095_v19  ;;  %v1097_v62 = vadd.f32 %v1049_v63, %v984_v49 }
 0x18c   : > { %v1156_v15 = vpop.f32.mrf.mxu0  ;;  %v1486_v17 = vpop.f32.mrf.mxu1 }
 0x18d   : > { %v1226_v35 = vadd.f32 %v1217_v20, %v1208_v27  ;;  %v1206_v39 = vadd.f32 %v1156_v15, %v1093_v50 }
 0x18e   : > { %v1158_v37 = vpop.f32.mrf.mxu0  ;;  %v1202_v44 = vpop.f32.mrf.mxu1 }
 0x18f   : > { %v1207_v31 = vadd.f32 %v1158_v37, %v1094_v46  ;;  %v1211_v33 = vadd.f32 %v1202_v44, %v1098_v29  ;;  %v1232_v53 = vmax.f32 %v1226_v35, 0.0  ;;  %v1224_v59 = vadd.f32 %v1217_v20, %v1206_v39 }
 0x190   : > { %v1160_v51 = vpop.f32.mrf.mxu0  ;;  %v1487_v47 = vpop.f32.mrf.mxu1 }
 0x191   : > { %v1209_v54 = vadd.f32 %v1160_v51, %v1096_v45  ;;  %v1229_v55 = vadd.f32 %v1222_v36, %v1211_v33  ;;  %v1225_v41 = vadd.f32 %v1217_v20, %v1207_v31  ;;  %v1255_v8 = vmul.f32 %v1249_v58, %v1232_v53 }
 0x192   : > { %v1162_v10 = vpop.f32.mrf.mxu0  ;;  %v1230_v61 = vmax.f32 %v1224_v59, 0.0 }
 0x193   : > { %v1235_v14 = vmax.f32 %v1229_v55, 0.0  ;;  %v1227_v56 = vadd.f32 %v1222_v36, %v1209_v54  ;;  %v1210_v0 = vadd.f32 %v1162_v10, %v1097_v62  ;;  %v1231_v52 = vmax.f32 %v1225_v41, 0.0 }
 0x194   : > { %v1253_v26 = vmul.f32 %v1241_v5, %v1230_v61 }
 0x195   : > { %v1258_v22 = vmul.f32 %v1249_v58, %v1235_v14  ;;  %v1228_v60 = vadd.f32 %v1222_v36, %v1210_v0  ;;  %v1233_v4 = vmax.f32 %v1227_v56, 0.0  ;;  %v1254_v11 = vmul.f32 %v1245_v6, %v1231_v52 }
 0x197   : > { %v1261_v3 = vpack.c.bf16 %v1258_v22, %v1255_v8  ;;  %v1234_v16 = vmax.f32 %v1228_v60, 0.0  ;;  %v1256_v57 = vmul.f32 %v1241_v5, %v1233_v4 }
 0x199   : > { %1269 = vrot.lane.b32.xlu0 %v1261_v3, %s1543_s30  ;;  %v1257_v12 = vmul.f32 %v1245_v6, %v1234_v16  ;;  %v1259_v1 = vpack.c.bf16 %v1256_v57, %v1253_v26 }
 0x19b   : > { %v1260_v24 = vpack.c.bf16 %v1257_v12, %v1254_v11 }
 0x19d   : > { %1267 = vrot.lane.b32.xlu1 %v1260_v24, %s1543_s30 }
 0x1a1   : > { %1265 = vrot.lane.b32.xlu1 %v1259_v1, %s1543_s30 }
 0x20b   : > { %v1270_v30 = vpop.permute.xlu0 %1269 }
 0x20f   : > { %v1268_v13 = vpop.permute.xlu1 %1267 }
 0x210   : > { %v1273_v19 = vsel %vm1271_vm10, %v1268_v13, %v1270_v30 }
 0x211   : > { %v1280_v20 = vsel %vm1278_vm11, %v1273_v19, 0 }
 0x212   : > { %v1411_v32 = vcombine.low %v1280_v20, %v1280_v20  ;;  %v1413_v34 = vcombine.high %v1280_v20, %v1280_v20 }
 0x213   : > { %v1266_v63 = vpop.permute.xlu1 %1265 }
 0x214   : > { %1299 = vst.msk [vmem:[%s197_s7 + $0x8] sm:$0xf] %vm1298_vm12, %v1411_v32  ;;  %1301 = vst.msk [vmem:[%s197_s7 + $0x14] sm:$0xf] %vm1298_vm12, %v1413_v34  ;;  %v1272_v7 = vsel %vm1271_vm10, %v1266_v63, %v1268_v13  ;;  %v1277_v9 = vsel %vm1271_vm10, 0, %v1266_v63 }
 0x215   : > { %v1410_v38 = vcombine.low %v1277_v9, %v1272_v7  ;;  %v1412_v21 = vcombine.high %v1277_v9, %v1272_v7 }
 0x217   : > { %1297 = vst [vmem:[%s197_s7] sm:$0xff] %v1410_v38  ;;  %1300 = vst [vmem:[%s197_s7 + $0xc] sm:$0xff] %v1412_v21 }
 0x218 PF: > { %s14_s15 = sadd.s32 1, %s1530_s15  }
 0x219   : > { %p11_p4 = scmp.ge.s32.totalorder %s14_s15, 4  }
 0x21b   :  { %13 = sbr.rel (!%p11_p4) target bundleno = 1 (0x1), region = 74 }

// kernel: fwd.3
= control target key start
LH: loop header
LB: loop body
LE: loop exit
PB: predicated region body
PF: predicated region fallthrough
CT: control target
= control target key end

     0   :  { %s1757_s18 = smov 0   ;;  %s1972_s0 = inlined_call_operand.vmem [shape: bf16[9,16,3], index: 0, kind: input, shape index: {}]   ;;  %s1973_s1 = inlined_call_operand.vmem [shape: f32[16,1], index: 1, kind: input, shape index: {}]   ;;  %s1974_s2 = inlined_call_operand.vmem [shape: f32[1,286], index: 2, kind: input, shape index: {}]   ;;  %s1975_s3 = inlined_call_operand.vmem [shape: bf16[2,3,324], index: 3, kind: input, shape index: {}]   ;;  %s1976_s4 = inlined_call_operand.vmem [shape: bf16[2,16,324], index: 4, kind: output, shape index: {0}]   ;;  %s1977_s5 = inlined_call_operand.vmem [shape: f32[2,16,2], index: 5, kind: output, shape index: {1}]  }
   0x1 LB: > { %s1538_s19 = sadd.s32 4294967295, %s1711_s18   ;;  %p1542_p0 = scmp.ge.s32.totalorder %s1711_s18, 1  ;;  %s1711_s18 = sphi %s1757_s18, %s16_s18  }
   0x2   : > { %p190_p1 = scmp.lt.s32.totalorder %s1711_s18, 3 }
   0x4   : > { %p191_p2 = pnand %p1542_p0, %p190_p1 }
   0x5   : > { %p223_p3 = scmp.lt.s32.totalorder (!%p191_p2), %s1538_s19, 1  ;;  %s1717_s24 = smov (!%p191_p2), 127  }
   0x6   : > { %194 = sbr.rel (%p191_p2) target bundleno = 627 (0x273), region = 36  ;;  %s1718_s25 = smov (!%p191_p2), 126  }
   0x7   : > { %s1719_s26 = smov (!%p191_p2), 110   ;;  %s1720_s27 = smov (!%p191_p2), 109  }
   0x8   : > { %s1721_s28 = smov (!%p191_p2), 108   ;;  %s1722_s29 = smov (!%p191_p2), 92  }
   0x9   : > { %s1723_s30 = smov (!%p191_p2), 91   ;;  %s1724_s6 = smov (!%p191_p2), 90  }
   0xa   : > { %s1726_s8 = smov (!%p191_p2), 19  }
   0xb   : > { %v255_v0 = vlaneseq  ;;  %v1713_v1 = vmov 1983009808   ;;  %s1979_s19 = smov (!%p223_p3, %s1538_s19), 1  ;;  %v1714_v5 = vmov 0.0   ;;  %vm1715_vm0 = vmmov 0   ;;  %v1311_v13 = vld [vmem:[%s1973_s1] sm:$0xff] }
   0xc   : > { %v253_v2 = vunpack.c.l.s4 %v1713_v1  ;;  %1615 = vmatprep.subr.bf16.mxu1 %v1714_v5  ;;  %s1669_s20 = smul.u32 6, %s1979_s19  ;;  %1617 = vmatprep.mubr.msk.bf16.mxu1 %vm1715_vm0, %v1714_v5  ;;  %v1716_v10 = vmov 0   ;;  %v1312_v14 = vld [vmem:[%s1973_s1 + $0x8] sm:$0xff]  ;;  %vm280_vm1 = vcmask 1040384   ;;  %vm273_vm2 = vcmask 1039360   ;;  %v1697_v38 = vld [vmem:[%s1972_s0] sm:$0xff]  }
   0xd   : > { %v1767_v3 = vshrl.u32 %v255_v0, 7  ;;  %325 = vmatprep.mubr.bf16.mxu0 %v1716_v10  ;;  %1693 = vset.pattern.permute.xlu0 %v1716_v10  ;;  %vm281_vm3 = vcmask 1041408   ;;  %v1725_v17 = vmov 65535   ;;  %v1696_v26 = vld [vmem:[%s1972_s0 + $0x8] sm:$0xff]   ;;  %vm492_vm4 = vcmask 1031168   ;;  %v1698_v47 = vld [vmem:[%s1972_s0 + $0x10] sm:$0xff]  }
   0xe   : > { %v254_v4 = vunpack.c.0.s8 %v253_v2  ;;  %s227_s23 = scalar_lea.vmem %s1975_s3, %s1669_s20  ;;  %1694 = vset.pattern.permute.xlu1 %v1716_v10  ;;  %v282_v18 = vsel %vm280_vm1, 4294967295, %v1725_v17  ;;  %vm276_vm5 = vcmask 23552   ;;  %vm611_vm6 = vcmask 900096   ;;  %v1699_v56 = vld [vmem:[%s1972_s0 + $0x18] sm:$0xff]   ;;  %v1700_v1 = vld [vmem:[%s1972_s0 + $0x20] sm:$0xff]   ;;  %s1596_s9 = sshll.u32 %s1979_s19, 4 }
   0xf   : > { %v239_v7 = vld [vmem:[%s227_s23] sm:$0x3f]  ;;  %v1818_v22 = vsel %vm281_vm3, %v282_v18, 0  ;;  %vm730_vm7 = vcmask 891904   ;;  %vm849_vm8 = vcmask 883712   ;;  %vm968_vm9 = vcmask 752640   ;;  %s237_s13 = scalar_lea.vmem %s1977_s5, %s1596_s9 }
  0x10   : > { %v257_v6 = vsub.s32 %v254_v4, %v1767_v3  ;;  %v251_v9 = vcombine.high %v239_v7, %v239_v7  ;;  %vm1087_vm10 = vcmask 744448   ;;  %vm1206_vm11 = vcmask 736256   ;;  %s1670_s10 = smul.u32 24, %s1979_s19 }
  0x11   : > { %vm1408_vm12 = vcmask 244736   ;;  %vm1370_vm13 = vcmask 154624   ;;  %vm1377_vm14 = vcmask 400384   ;;  %vm1444_vm15 = vcmask 7168  }
  0x12   : > { %v1777_v8 = vrot.slane %v239_v7, %v257_v6  ;;  %v1788_v12 = vrot.slane %v251_v9, %v257_v6  ;;  %s232_s16 = scalar_lea.vmem %s1976_s4, %s1670_s10  ;;  %vm1397_vm1 = vcmask 551936  }
  0x14   : > { %267 = vrot.lane.b32.xlu1 %v1777_v8, %s1717_s24  ;;  %v1784_v11 = vcombine.high %v1777_v8, %v1777_v8  ;;  %v392_v29 = vand.u32 %v1818_v22, %v1788_v12  ;;  %v386_v32 = vand.u32 %v1818_v22, %v1777_v8 }
  0x16   : > { %269 = vrot.lane.b32.xlu0 %v1784_v11, %s1717_s24  ;;  %v389_v27 = vand.u32 %v1818_v22, %v1784_v11 }
  0x18   : > { %488 = vrot.lane.b32.xlu1 %v1784_v11, %s1718_s25 }
  0x1a   : > { %271 = vrot.lane.b32.xlu0 %v1788_v12, %s1717_s24 }
  0x1c   : > { %486 = vrot.lane.b32.xlu1 %v1777_v8, %s1718_s25 }
  0x1e   : > { %490 = vrot.lane.b32.xlu0 %v1788_v12, %s1718_s25 }
  0x20   : > { %609 = vrot.lane.b32.xlu1 %v1788_v12, %s1719_s26 }
  0x22   : > { %607 = vrot.lane.b32.xlu0 %v1784_v11, %s1719_s26 }
  0x24   : > { %726 = vrot.lane.b32.xlu1 %v1784_v11, %s1720_s27 }
  0x26   : > { %605 = vrot.lane.b32.xlu0 %v1777_v8, %s1719_s26 }
  0x28   : > { %724 = vrot.lane.b32.xlu1 %v1777_v8, %s1720_s27 }
  0x2a   : > { %728 = vrot.lane.b32.xlu0 %v1788_v12, %s1720_s27 }
  0x2c   : > { %847 = vrot.lane.b32.xlu1 %v1788_v12, %s1721_s28 }
  0x2e   : > { %845 = vrot.lane.b32.xlu0 %v1784_v11, %s1721_s28 }
  0x30   : > { %964 = vrot.lane.b32.xlu1 %v1784_v11, %s1722_s29 }
  0x32   : > { %843 = vrot.lane.b32.xlu0 %v1777_v8, %s1721_s28 }
  0x34   : > { %962 = vrot.lane.b32.xlu1 %v1777_v8, %s1722_s29 }
  0x36   : > { %966 = vrot.lane.b32.xlu0 %v1788_v12, %s1722_s29 }
  0x38   : > { %1085 = vrot.lane.b32.xlu1 %v1788_v12, %s1723_s30 }
  0x3a   : > { %1083 = vrot.lane.b32.xlu0 %v1784_v11, %s1723_s30 }
  0x3c   : > { %1202 = vrot.lane.b32.xlu1 %v1784_v11, %s1724_s6 }
  0x3e   : > { %1081 = vrot.lane.b32.xlu0 %v1777_v8, %s1723_s30 }
  0x40   : > { %1200 = vrot.lane.b32.xlu1 %v1777_v8, %s1724_s6 }
  0x42   : > { %1204 = vrot.lane.b32.xlu0 %v1788_v12, %s1724_s6 }
  0x44   : > { %1320 = vperm.xlu1 %1694, %v1312_v14  }
  0x46   : > { %1315 = vperm.xlu0 %1693, %v1311_v13   ;;  %v1701_v13 = vld [vmem:[%s1972_s0 + $0x28] sm:$0xff]  }
  0x86   : > { %v268_v15 = vpop.permute.xlu1 %267 }
  0x88   : > { %v270_v16 = vpop.permute.xlu0 %269 }
  0x89   : > { %v274_v20 = vsel %vm273_vm2, %v268_v15, %v270_v16 }
  0x8a   : > { %v489_v19 = vpop.permute.xlu1 %488  ;;  %v285_v28 = vand.u32 %v1818_v22, %v274_v20 }
  0x8c   : > { %v272_v21 = vpop.permute.xlu0 %271 }
  0x8d   : > { %v291_v23 = vand.u32 %v1818_v22, %v272_v21  ;;  %v275_v24 = vsel %vm273_vm2, %v270_v16, %v272_v21 }
  0x8e   : > { %v288_v25 = vand.u32 %v1818_v22, %v275_v24  ;;  %v487_v30 = vpop.permute.xlu1 %486 }
  0x8f   : > { %1616 = vmatpush3.bf16.msra.mxu1 %v291_v23  ;;  %v493_v37 = vsel %vm492_vm4, %v487_v30, %v489_v19  ;;  %v1702_v23 = vld [vmem:[%s1972_s0 + $0x30] sm:$0xff]   ;;  %v1703_v30 = vld [vmem:[%s1972_s0 + $0x38] sm:$0xff]  }
  0x90   : > { %307 = vmatprep.subr.bf16.mxu0 %v288_v25  ;;  %v491_v31 = vpop.permute.xlu0 %490  ;;  %1621 = vmatprep.subr.bf16.mxu1 %v1714_v5  ;;  %v499_v42 = vand.u32 %v493_v37, %v1818_v22 }
  0x91   : > { %308 = vmatpush1.bf16.msra.mxu0 %v285_v28  ;;  %v494_v33 = vsel %vm492_vm4, %v489_v19, %v491_v31  ;;  %v505_v39 = vand.u32 %v491_v31, %v1818_v22 }
  0x92   : > { %1618 = vmatmul.mubr.msk.bf16.vlgmr.msra.gmra.mxu1 %vm276_vm5, %v1696_v26  ;;  %408 = vmatprep.subr.bf16.mxu0 %v389_v27  ;;  %v502_v34 = vand.u32 %v494_v33, %v1818_v22  ;;  %v610_v36 = vpop.permute.xlu1 %609  ;;  %v1704_v33 = vld [vmem:[%s1972_s0 + $0x40] sm:$0xff]  }
  0x93   : > { %1622 = vmatpush3.bf16.msra.mxu1 %v392_v29  ;;  %1623 = vmatprep.mubr.msk.bf16.mxu1 %vm1715_vm0, %v1714_v5  ;;  %v624_v48 = vand.u32 %v610_v36, %v1818_v22 }
  0x94   : > { %1550 = vmatmul.mubr.msk.bf16.vlgmr.msra.gmra.mxu0 %vm276_vm5, %v1696_v26  ;;  %v608_v35 = vpop.permute.xlu0 %607  ;;  %1627 = vmatprep.subr.bf16.mxu1 %v1714_v5 }
  0x95   : > { %409 = vmatpush1.bf16.msra.mxu0 %v386_v32  ;;  %426 = vmatprep.mubr.bf16.mxu0 %v1716_v10  ;;  %v613_v40 = vsel %vm611_vm6, %v608_v35, %v610_v36 }
  0x96   : > { %521 = vmatprep.subr.bf16.mxu0 %v502_v34  ;;  %v621_v43 = vand.u32 %v613_v40, %v1818_v22  ;;  %v727_v44 = vpop.permute.xlu1 %726 }
  0x98   : > { %v606_v41 = vpop.permute.xlu0 %605 }
  0x99   : > { %v612_v46 = vsel %vm611_vm6, %v606_v41, %v608_v35 }
  0x9a   : > { %1624 = vmatmul.mubr.msk.bf16.vlgmr.msra.gmra.mxu1 %vm276_vm5, %v1697_v38  ;;  %v725_v50 = vpop.permute.xlu1 %724  ;;  %v618_v51 = vand.u32 %v612_v46, %v1818_v22 }
  0x9b   : > { %1628 = vmatpush3.bf16.msra.mxu1 %v505_v39  ;;  %1629 = vmatprep.mubr.msk.bf16.mxu1 %vm1715_vm0, %v1714_v5  ;;  %v731_v55 = vsel %vm730_vm7, %v725_v50, %v727_v44 }
  0x9c   : > { %1553 = vmatmul.mubr.msk.bf16.vlgmr.msra.gmra.mxu0 %vm276_vm5, %v1697_v38  ;;  %1633 = vmatprep.subr.bf16.mxu1 %v1714_v5  ;;  %v729_v45 = vpop.permute.xlu0 %728  ;;  %v737_v60 = vand.u32 %v731_v55, %v1818_v22 }
  0x9d   : > { %522 = vmatpush1.bf16.msra.mxu0 %v499_v42  ;;  %539 = vmatprep.mubr.bf16.mxu0 %v1716_v10  ;;  %v732_v49 = vsel %vm730_vm7, %v727_v44, %v729_v45  ;;  %v743_v57 = vand.u32 %v729_v45, %v1818_v22 }
  0x9e   : > { %640 = vmatprep.subr.bf16.mxu0 %v621_v43  ;;  %v740_v52 = vand.u32 %v732_v49, %v1818_v22  ;;  %v848_v54 = vpop.permute.xlu1 %847 }
  0x9f   : > { %v862_v2 = vand.u32 %v848_v54, %v1818_v22 }
  0xa0   : > { %v846_v53 = vpop.permute.xlu0 %845 }
  0xa1   : > { %v851_v58 = vsel %vm849_vm8, %v846_v53, %v848_v54 }
  0xa2   : > { %1630 = vmatmul.mubr.msk.bf16.vlgmr.msra.gmra.mxu1 %vm276_vm5, %v1698_v47  ;;  %v859_v61 = vand.u32 %v851_v58, %v1818_v22  ;;  %v965_v62 = vpop.permute.xlu1 %964 }
  0xa3   : > { %1634 = vmatpush3.bf16.msra.mxu1 %v624_v48  ;;  %1635 = vmatprep.mubr.msk.bf16.mxu1 %vm1715_vm0, %v1714_v5 }
  0xa4   : > { %1558 = vmatmul.mubr.msk.bf16.vlgmr.msra.gmra.mxu0 %vm276_vm5, %v1698_v47  ;;  %1639 = vmatprep.subr.bf16.mxu1 %v1714_v5  ;;  %v844_v59 = vpop.permute.xlu0 %843 }
  0xa5   : > { %641 = vmatpush1.bf16.msra.mxu0 %v618_v51  ;;  %658 = vmatprep.mubr.bf16.mxu0 %v1716_v10  ;;  %v850_v0 = vsel %vm849_vm8, %v844_v59, %v846_v53 }
  0xa6   : > { %759 = vmatprep.subr.bf16.mxu0 %v740_v52  ;;  %v963_v6 = vpop.permute.xlu1 %962  ;;  %v856_v7 = vand.u32 %v850_v0, %v1818_v22 }
  0xa7   : > { %v969_v12 = vsel %vm968_vm9, %v963_v6, %v965_v62 }
  0xa8   : > { %v967_v63 = vpop.permute.xlu0 %966  ;;  %v975_v17 = vand.u32 %v969_v12, %v1818_v22 }
  0xa9   : > { %v970_v4 = vsel %vm968_vm9, %v965_v62, %v967_v63  ;;  %v981_v14 = vand.u32 %v967_v63, %v1818_v22 }
  0xaa   : > { %1636 = vmatmul.mubr.msk.bf16.vlgmr.msra.gmra.mxu1 %vm276_vm5, %v1699_v56  ;;  %v978_v8 = vand.u32 %v970_v4, %v1818_v22  ;;  %v1086_v11 = vpop.permute.xlu1 %1085 }
  0xab   : > { %1640 = vmatpush3.bf16.msra.mxu1 %v743_v57  ;;  %1641 = vmatprep.mubr.msk.bf16.mxu1 %vm1715_vm0, %v1714_v5  ;;  %v1100_v24 = vand.u32 %v1086_v11, %v1818_v22 }
  0xac   : > { %1563 = vmatmul.mubr.msk.bf16.vlgmr.msra.gmra.mxu0 %vm276_vm5, %v1699_v56  ;;  %1645 = vmatprep.subr.bf16.mxu1 %v1714_v5  ;;  %v1084_v9 = vpop.permute.xlu0 %1083 }
  0xad   : > { %760 = vmatpush1.bf16.msra.mxu0 %v737_v60  ;;  %777 = vmatprep.mubr.bf16.mxu0 %v1716_v10  ;;  %v1089_v15 = vsel %vm1087_vm10, %v1084_v9, %v1086_v11 }
  0xae   : > { %878 = vmatprep.subr.bf16.mxu0 %v859_v61  ;;  %v1097_v18 = vand.u32 %v1089_v15, %v1818_v22  ;;  %v1203_v20 = vpop.permute.xlu1 %1202 }
  0xb0   : > { %v1082_v16 = vpop.permute.xlu0 %1081 }
  0xb1   : > { %v1088_v21 = vsel %vm1087_vm10, %v1082_v16, %v1084_v9 }
  0xb2   : > { %1642 = vmatmul.mubr.msk.bf16.vlgmr.msra.gmra.mxu1 %vm276_vm5, %v1700_v1  ;;  %v1094_v26 = vand.u32 %v1088_v21, %v1818_v22  ;;  %v1201_v28 = vpop.permute.xlu1 %1200 }
  0xb3   : > { %1646 = vmatpush3.bf16.msra.mxu1 %v862_v2  ;;  %1647 = vmatprep.mubr.msk.bf16.mxu1 %vm1715_vm0, %v1714_v5  ;;  %v1207_v29 = vsel %vm1206_vm11, %v1201_v28, %v1203_v20 }
  0xb4   : > { %1568 = vmatmul.mubr.msk.bf16.vlgmr.msra.gmra.mxu0 %vm276_vm5, %v1700_v1  ;;  %1651 = vmatprep.subr.bf16.mxu1 %v1714_v5  ;;  %v1205_v19 = vpop.permute.xlu0 %1204  ;;  %v1213_v32 = vand.u32 %v1207_v29, %v1818_v22 }
  0xb5   : > { %879 = vmatpush1.bf16.msra.mxu0 %v856_v7  ;;  %896 = vmatprep.mubr.bf16.mxu0 %v1716_v10  ;;  %v1208_v25 = vsel %vm1206_vm11, %v1203_v20, %v1205_v19  ;;  %v1219_v31 = vand.u32 %v1205_v19, %v1818_v22 }
  0xb6   : > { %997 = vmatprep.subr.bf16.mxu0 %v978_v8  ;;  %v1216_v27 = vand.u32 %v1208_v25, %v1818_v22 }
  0xba   : > { %1648 = vmatmul.mubr.msk.bf16.vlgmr.msra.gmra.mxu1 %vm276_vm5, %v1701_v13 }
  0xbb   : > { %1652 = vmatpush3.bf16.msra.mxu1 %v981_v14  ;;  %1653 = vmatprep.mubr.msk.bf16.mxu1 %vm1715_vm0, %v1714_v5 }
  0xbc   : > { %1573 = vmatmul.mubr.msk.bf16.vlgmr.msra.gmra.mxu0 %vm276_vm5, %v1701_v13  ;;  %1657 = vmatprep.subr.bf16.mxu1 %v1714_v5 }
  0xbd   : > { %998 = vmatpush1.bf16.msra.mxu0 %v975_v17  ;;  %1015 = vmatprep.mubr.bf16.mxu0 %v1716_v10 }
  0xbe   : > { %1116 = vmatprep.subr.bf16.mxu0 %v1097_v18 }
  0xc2   : > { %1654 = vmatmul.mubr.msk.bf16.vlgmr.msra.gmra.mxu1 %vm276_vm5, %v1702_v23 }
  0xc3   : > { %1658 = vmatpush3.bf16.msra.mxu1 %v1100_v24  ;;  %1659 = vmatprep.mubr.msk.bf16.mxu1 %vm1715_vm0, %v1714_v5 }
  0xc4   : > { %1578 = vmatmul.mubr.msk.bf16.vlgmr.msra.gmra.mxu0 %vm276_vm5, %v1702_v23  ;;  %1663 = vmatprep.subr.bf16.mxu1 %v1714_v5 }
  0xc5   : > { %1117 = vmatpush1.bf16.msra.mxu0 %v1094_v26  ;;  %1134 = vmatprep.mubr.bf16.mxu0 %v1716_v10 }
  0xc6   : > { %1235 = vmatprep.subr.bf16.mxu0 %v1216_v27 }
  0xca   : > { %1660 = vmatmul.mubr.msk.bf16.vlgmr.msra.gmra.mxu1 %vm276_vm5, %v1703_v30 }
  0xcb   : > { %1664 = vmatpush3.bf16.msra.mxu1 %v1219_v31  ;;  %1665 = vmatprep.mubr.msk.bf16.mxu1 %vm1715_vm0, %v1714_v5  ;;  %vm1447_vm0 = vcmask 15360  }
  0xcc   : > { %1583 = vmatmul.mubr.msk.bf16.vlgmr.msra.gmra.mxu0 %vm276_vm5, %v1703_v30 }
  0xcd   : > { %1236 = vmatpush1.bf16.msra.mxu0 %v1213_v32  ;;  %1253 = vmatprep.mubr.bf16.mxu0 %v1716_v10 }
  0xd2   : > { %1666 = vmatmul.mubr.msk.bf16.vlgmr.msra.gmra.mxu1 %vm276_vm5, %v1704_v33 }
  0xd4   : > { %1588 = vmatmul.mubr.msk.bf16.vlgmr.msra.gmra.mxu0 %vm276_vm5, %v1704_v33 }
 0x152   : > { %v370_v22 = vpop.f32.mrf.mxu1 }
 0x154   : > { %v327_v34 = vpop.f32.mrf.mxu0  ;;  %v1619_v35 = vpop.f32.mrf.mxu1 }
 0x156   : > { %v329_v36 = vpop.f32.mrf.mxu0  ;;  %v373_v37 = vpop.f32.mrf.mxu1 }
 0x158   : > { %v1941_v38 = vpop.f32.mrf.mxu0  ;;  %v1620_v5 = vpop.f32.mrf.mxu1 }
 0x15a   : > { %v333_v39 = vpop.f32.mrf.mxu0  ;;  %v471_v40 = vpop.f32.mrf.mxu1 }
 0x15b   : > { %v472_v21 = vadd.f32 %v471_v40, %v370_v22 }
 0x15c   : > { %v428_v41 = vpop.f32.mrf.mxu0  ;;  %v1625_v10 = vpop.f32.mrf.mxu1 }
 0x15d   : > { %v429_v25 = vadd.f32 %v428_v41, %v327_v34 }
 0x15e   : > { %v430_v42 = vpop.f32.mrf.mxu0  ;;  %v474_v43 = vpop.f32.mrf.mxu1 }
 0x15f   : > { %v431_v29 = vadd.f32 %v430_v42, %v329_v36  ;;  %v475_v30 = vadd.f32 %v474_v43, %v373_v37 }
 0x160   : > { %v432_v44 = vpop.f32.mrf.mxu0  ;;  %v1626_v45 = vpop.f32.mrf.mxu1 }
 0x162   : > { %v434_v46 = vpop.f32.mrf.mxu0  ;;  %v584_v47 = vpop.f32.mrf.mxu1 }
 0x163   : > { %v593_v26 = vadd.f32 %v584_v47, %v472_v21 }
 0x164   : > { %v541_v48 = vpop.f32.mrf.mxu0  ;;  %v1631_v49 = vpop.f32.mrf.mxu1 }
 0x165   : > { %v591_v31 = vadd.f32 %v541_v48, %v429_v25 }
 0x166   : > { %v543_v50 = vpop.f32.mrf.mxu0  ;;  %v587_v51 = vpop.f32.mrf.mxu1 }
 0x167   : > { %v592_v5 = vadd.f32 %v543_v50, %v431_v29  ;;  %v596_v10 = vadd.f32 %v587_v51, %v475_v30 }
 0x168   : > { %v545_v52 = vpop.f32.mrf.mxu0  ;;  %v1632_v53 = vpop.f32.mrf.mxu1 }
 0x169   : > { %v433_v53 = vadd.f32 %v432_v44, %v1941_v38 }
 0x16a   : > { %v547_v54 = vpop.f32.mrf.mxu0  ;;  %v703_v55 = vpop.f32.mrf.mxu1 }
 0x16b   : > { %v712_v32 = vadd.f32 %v703_v55, %v593_v26 }
 0x16c   : > { %v660_v56 = vpop.f32.mrf.mxu0  ;;  %v1637_v57 = vpop.f32.mrf.mxu1 }
 0x16d   : > { %v710_v45 = vadd.f32 %v660_v56, %v591_v31  ;;  %v435_v57 = vadd.f32 %v434_v46, %v333_v39 }
 0x16e   : > { %v662_v58 = vpop.f32.mrf.mxu0  ;;  %v706_v59 = vpop.f32.mrf.mxu1 }
 0x16f   : > { %v715_v34 = vadd.f32 %v706_v59, %v596_v10  ;;  %v595_v36 = vadd.f32 %v547_v54, %v435_v57 }
 0x170   : > { %v664_v60 = vpop.f32.mrf.mxu0  ;;  %v1638_v61 = vpop.f32.mrf.mxu1 }
 0x171   : > { %v711_v61 = vadd.f32 %v662_v58, %v592_v5 }
 0x172   : > { %v666_v62 = vpop.f32.mrf.mxu0  ;;  %v822_v63 = vpop.f32.mrf.mxu1 }
 0x173   : > { %v831_v49 = vadd.f32 %v822_v63, %v712_v32  ;;  %v714_v56 = vadd.f32 %v666_v62, %v595_v36 }
 0x174   : > { %v779_v0 = vpop.f32.mrf.mxu0  ;;  %v1643_v1 = vpop.f32.mrf.mxu1 }
 0x175   : > { %v829_v41 = vadd.f32 %v779_v0, %v710_v45  ;;  %v594_v1 = vadd.f32 %v545_v52, %v433_v53 }
 0x176   : > { %v781_v2 = vpop.f32.mrf.mxu0  ;;  %v825_v4 = vpop.f32.mrf.mxu1 }
 0x177   : > { %v830_v43 = vadd.f32 %v781_v2, %v711_v61  ;;  %v834_v48 = vadd.f32 %v825_v4, %v715_v34  ;;  %v713_v51 = vadd.f32 %v664_v60, %v594_v1  ;;  %v1316_v2 = vpop.permute.xlu0 %1315 }
 0x178   : > { %v783_v6 = vpop.f32.mrf.mxu0  ;;  %v1644_v7 = vpop.f32.mrf.mxu1 }
 0x179   : > { %v832_v58 = vadd.f32 %v783_v6, %v713_v51 }
 0x17a   : > { %v785_v8 = vpop.f32.mrf.mxu0  ;;  %v941_v9 = vpop.f32.mrf.mxu1 }
 0x17b   : > { %v950_v47 = vadd.f32 %v941_v9, %v831_v49  ;;  %v833_v59 = vadd.f32 %v785_v8, %v714_v56 }
 0x17c   : > { %v898_v11 = vpop.f32.mrf.mxu0  ;;  %v1649_v12 = vpop.f32.mrf.mxu1 }
 0x17d   : > { %v948_v55 = vadd.f32 %v898_v11, %v829_v41 }
 0x17e   : > { %v900_v13 = vpop.f32.mrf.mxu0  ;;  %v944_v14 = vpop.f32.mrf.mxu1 }
 0x17f   : > { %v949_v38 = vadd.f32 %v900_v13, %v830_v43  ;;  %v953_v39 = vadd.f32 %v944_v14, %v834_v48  ;;  %v1321_v13 = vpop.permute.xlu1 %1320 }
 0x180   : > { %v902_v15 = vpop.f32.mrf.mxu0  ;;  %v1650_v16 = vpop.f32.mrf.mxu1 }
 0x181   : > { %v951_v4 = vadd.f32 %v902_v15, %v832_v58 }
 0x182   : > { %v904_v17 = vpop.f32.mrf.mxu0  ;;  %v1060_v18 = vpop.f32.mrf.mxu1 }
 0x183   : > { %v1069_v50 = vadd.f32 %v1060_v18, %v950_v47  ;;  %v952_v60 = vadd.f32 %v904_v17, %v833_v59  ;;  %v1339_v17 = vsub.s32 0, %v1767_v3 }
 0x184   : > { %v1017_v19 = vpop.f32.mrf.mxu0  ;;  %v1655_v20 = vpop.f32.mrf.mxu1 }
 0x185   : > { %v1067_v44 = vadd.f32 %v1017_v19, %v948_v55  ;;  %v1347_v19 = vsub.s32 2, %v1767_v3 }
 0x186   : > { %v1019_v23 = vpop.f32.mrf.mxu0  ;;  %v1063_v24 = vpop.f32.mrf.mxu1 }
 0x187   : > { %v1068_v52 = vadd.f32 %v1019_v23, %v949_v38  ;;  %v1072_v54 = vadd.f32 %v1063_v24, %v953_v39  ;;  %v1335_v23 = vld [vmem:[%s1974_s2] sm:$0x7] }
 0x188   : > { %v1021_v27 = vpop.f32.mrf.mxu0  ;;  %v1656_v28 = vpop.f32.mrf.mxu1  ;;  %v1348_v10 = vrot.slane %v1335_v23, %v1347_v19 }
 0x189   : > { %v1070_v14 = vadd.f32 %v1021_v27, %v951_v4 }
 0x18a   : > { %v1023_v33 = vpop.f32.mrf.mxu0  ;;  %v1179_v35 = vpop.f32.mrf.mxu1 }
 0x18b   : > { %v1188_v46 = vadd.f32 %v1179_v35, %v1069_v50  ;;  %v1071_v26 = vadd.f32 %v1023_v33, %v952_v60  ;;  %v1343_v35 = vsub.s32 1, %v1767_v3 }
 0x18c   : > { %v1136_v22 = vpop.f32.mrf.mxu0  ;;  %v1661_v40 = vpop.f32.mrf.mxu1 }
 0x18d   : > { %v1186_v12 = vadd.f32 %v1136_v22, %v1067_v44  ;;  %v1340_v22 = vrot.slane %v1335_v23, %v1339_v17  ;;  %v1344_v41 = vrot.slane %v1335_v23, %v1343_v35 }
 0x18e   : > { %v1138_v37 = vpop.f32.mrf.mxu0  ;;  %v1182_v42 = vpop.f32.mrf.mxu1 }
 0x18f   : > { %v1187_v62 = vadd.f32 %v1138_v37, %v1068_v52  ;;  %v1191_v20 = vadd.f32 %v1182_v42, %v1072_v54 }
 0x190   : > { %v1140_v63 = vpop.f32.mrf.mxu0  ;;  %v1662_v7 = vpop.f32.mrf.mxu1 }
 0x191   : > { %v1189_v28 = vadd.f32 %v1140_v63, %v1070_v14 }
 0x192   : > { %v1142_v0 = vpop.f32.mrf.mxu0  ;;  %v1298_v9 = vpop.f32.mrf.mxu1 }
 0x193   : > { %v1307_v16 = vadd.f32 %v1298_v9, %v1188_v46  ;;  %v1190_v32 = vadd.f32 %v1142_v0, %v1071_v26 }
 0x194   : > { %v1255_v11 = vpop.f32.mrf.mxu0  ;;  %v1667_v18 = vpop.f32.mrf.mxu1 }
 0x195   : > { %v1305_v21 = vadd.f32 %v1255_v11, %v1186_v12  ;;  %v1325_v6 = vadd.f32 %v1316_v2, %v1307_v16 }
 0x196   : > { %v1257_v8 = vpop.f32.mrf.mxu0  ;;  %v1301_v25 = vpop.f32.mrf.mxu1 }
 0x197   : > { %v1306_v24 = vadd.f32 %v1257_v8, %v1187_v62  ;;  %v1310_v15 = vadd.f32 %v1301_v25, %v1191_v20  ;;  %v1323_v29 = vadd.f32 %v1316_v2, %v1305_v21  ;;  %v1331_v45 = vmax.f32 %v1325_v6, 0.0 }
 0x198   : > { %v1259_v30 = vpop.f32.mrf.mxu0  ;;  %v1668_v31 = vpop.f32.mrf.mxu1 }
 0x199   : > { %v1324_v27 = vadd.f32 %v1316_v2, %v1306_v24  ;;  %v1328_v5 = vadd.f32 %v1321_v13, %v1310_v15  ;;  %v1308_v33 = vadd.f32 %v1259_v30, %v1189_v28  ;;  %v1329_v40 = vmax.f32 %v1323_v29, 0.0 }
 0x19a   : > { %v1261_v49 = vpop.f32.mrf.mxu0  ;;  %v1354_v36 = vmul.f32 %v1348_v10, %v1331_v45 }
 0x19b   : > { %v1334_v53 = vmax.f32 %v1328_v5, 0.0  ;;  %v1309_v57 = vadd.f32 %v1261_v49, %v1190_v32  ;;  %v1326_v61 = vadd.f32 %v1321_v13, %v1308_v33  ;;  %v1330_v34 = vmax.f32 %v1324_v27, 0.0 }
 0x19c   : > { %v1352_v43 = vmul.f32 %v1340_v22, %v1329_v40 }
 0x19d   : > { %v1357_v47 = vmul.f32 %v1348_v10, %v1334_v53  ;;  %v1327_v1 = vadd.f32 %v1321_v13, %v1309_v57  ;;  %v1332_v37 = vmax.f32 %v1326_v61, 0.0  ;;  %v1353_v55 = vmul.f32 %v1344_v41, %v1330_v34 }
 0x19f   : > { %v1333_v42 = vmax.f32 %v1327_v1, 0.0  ;;  %v1360_v48 = vpack.c.bf16 %v1357_v47, %v1354_v36  ;;  %v1355_v3 = vmul.f32 %v1340_v22, %v1332_v37 }
 0x1a1   : > { %v1356_v50 = vmul.f32 %v1344_v41, %v1333_v42  ;;  %v1358_v51 = vpack.c.bf16 %v1355_v3, %v1352_v43  ;;  %v1406_v63 = vunpack.c.h.bf16 %v1360_v48  ;;  %v1403_v38 = vunpack.c.l.bf16 %v1360_v48 }
 0x1a3   : > { %v1359_v56 = vpack.c.bf16 %v1356_v50, %v1353_v55  ;;  %v1401_v7 = vunpack.c.l.bf16 %v1358_v51  ;;  %v1404_v39 = vunpack.c.h.bf16 %v1358_v51  ;;  %v1414_v52 = vsel %vm1408_vm12, %v1406_v63, 0.0 }
 0x1a4   : > { %v1409_v54 = vsel %vm1408_vm12, %v1403_v38, 0.0  ;;  %v1422_v12 = vmul.f32 %v1403_v38, %v1403_v38  ;;  %v1425_v20 = vmul.f32 %v1406_v63, %v1406_v63 }
 0x1a5   : > { %v1405_v44 = vunpack.c.h.bf16 %v1359_v56  ;;  %v1402_v46 = vunpack.c.l.bf16 %v1359_v56  ;;  %v1420_v0 = vmul.f32 %v1401_v7, %v1401_v7  ;;  %v1423_v62 = vmul.f32 %v1404_v39, %v1404_v39 }
 0x1a6   : > { %v1427_v11 = vsel %vm1408_vm12, %v1422_v12, 0.0  ;;  %v1432_v13 = vsel %vm1408_vm12, %v1425_v20, 0.0 }
 0x1a7   : > { %v1413_v58 = vadd.f32 %v1405_v44, %v1404_v39  ;;  %v1407_v59 = vadd.f32 %v1402_v46, %v1401_v7  ;;  %v1421_v9 = vmul.f32 %v1402_v46, %v1402_v46  ;;  %v1424_v60 = vmul.f32 %v1405_v44, %v1405_v44 }
 0x1a9   : > { %v1415_v16 = vadd.f32 %v1414_v52, %v1413_v58  ;;  %v1410_v2 = vadd.f32 %v1409_v54, %v1407_v59  ;;  %v1426_v4 = vadd.f32 %v1421_v9, %v1420_v0  ;;  %v1431_v21 = vadd.f32 %v1424_v60, %v1423_v62 }
 0x1ab   : > { %1416 = vadd.xlane.f32.xlu0 %v1415_v16  ;;  %1411 = vadd.xlane.f32.xlu1 %v1410_v2  ;;  %v1428_v18 = vadd.f32 %v1427_v11, %v1426_v4  ;;  %v1433_v14 = vadd.f32 %v1432_v13, %v1431_v21 }
 0x1af   : > { %1429 = vadd.xlane.f32.xlu0 %v1428_v18 }
 0x1bc   : > { %1368 = vrot.lane.b32.xlu1 %v1360_v48, %s1726_s8 }
 0x1c5   : > { %1366 = vrot.lane.b32.xlu0 %v1359_v56, %s1726_s8 }
 0x1e0   : > { %1434 = vadd.xlane.f32.xlu1 %v1433_v14 }
 0x1f1   : > { %1364 = vrot.lane.b32.xlu1 %v1358_v51, %s1726_s8 }
 0x234   : > { %v1417_v19 = vpop.xlane.xlu0 %1416  ;;  %v1412_v6 = vpop.xlane.xlu1 %1411 }
 0x235   : > { %v1418_v8 = vmul.f32 0.00390625, %v1412_v6  ;;  %v1419_v35 = vmul.f32 0.00390625, %v1417_v19 }
 0x237   : > { %v1438_v26 = vmul.f32 %v1418_v8, %v1418_v8  ;;  %v1439_v10 = vmul.f32 %v1419_v35, %v1419_v35 }
 0x238   : > { %v1430_v25 = vpop.xlane.xlu0 %1429  ;;  %v1369_v15 = vpop.permute.xlu1 %1368 }
 0x239   : > { %v1436_v23 = vmul.f32 0.00390625, %v1430_v25 }
 0x23b   : > { %v1440_v24 = vsub.f32 %v1436_v23, %v1438_v26 }
 0x23c   : > { %v1367_v28 = vpop.permute.xlu0 %1366 }
 0x23d   : > { %v1442_v17 = vmax.f32 %v1440_v24, 0.0  ;;  %v1372_v29 = vsel %vm1370_vm13, %v1367_v28, %v1369_v15 }
 0x23e   : > { %v1379_v30 = vsel %vm1377_vm14, %v1372_v29, 0 }
 0x23f   : > { %v1445_v31 = vsel %vm1444_vm15, %v1418_v8, %v1442_v17  ;;  %v1591_v32 = vcombine.low %v1379_v30, %v1379_v30  ;;  %v1593_v27 = vcombine.high %v1379_v30, %v1379_v30 }
 0x240   : > { %1448 = vst.msk [vmem:[%s237_s13] sm:$0xff] %vm1447_vm0, %v1445_v31 }
 0x241   : > { %1398 = vst.msk [vmem:[%s232_s16 + $0x8] sm:$0xf] %vm1397_vm1, %v1591_v32  ;;  %1400 = vst.msk [vmem:[%s232_s16 + $0x14] sm:$0xf] %vm1397_vm1, %v1593_v27 }
 0x269   : > { %v1435_v5 = vpop.xlane.xlu1 %1434 }
 0x26a   : > { %v1437_v45 = vmul.f32 0.00390625, %v1435_v5 }
 0x26c   : > { %v1441_v33 = vsub.f32 %v1437_v45, %v1439_v10 }
 0x26d   : > { %v1365_v49 = vpop.permute.xlu1 %1364 }
 0x26e   : > { %v1443_v53 = vmax.f32 %v1441_v33, 0.0  ;;  %v1371_v57 = vsel %vm1370_vm13, %v1365_v49, %v1367_v28  ;;  %v1376_v22 = vsel %vm1370_vm13, 0, %v1365_v49 }
 0x26f   : > { %v1590_v40 = vcombine.low %v1376_v22, %v1371_v57  ;;  %v1592_v61 = vcombine.high %v1376_v22, %v1371_v57 }
 0x270   : > { %v1446_v34 = vsel %vm1444_vm15, %v1419_v35, %v1443_v53 }
 0x271   : > { %1449 = vst.msk [vmem:[%s237_s13 + $0x8] sm:$0xff] %vm1447_vm0, %v1446_v34  ;;  %1396 = vst [vmem:[%s232_s16] sm:$0xff] %v1590_v40 }
 0x272   : > { %1399 = vst [vmem:[%s232_s16 + $0xc] sm:$0xff] %v1592_v61 }
 0x273 PF: > { %s16_s18 = sadd.s32 1, %s1711_s18  }
 0x274   : > { %p13_p4 = scmp.ge.s32.totalorder %s16_s18, 4  }
 0x276   :  { %15 = sbr.rel (!%p13_p4) target bundleno = 1 (0x1), region = 86 }

// kernel: fwd.5
= control target key start
LH: loop header
LB: loop body
LE: loop exit
PB: predicated region body
PF: predicated region fallthrough
CT: control target
= control target key end

     0   :  { %s1296_s15 = smov 0   ;;  %s1420_s0 = inlined_call_operand.vmem [shape: bf16[9,32,16], index: 0, kind: input, shape index: {}]   ;;  %s1421_s1 = inlined_call_operand.vmem [shape: f32[32,1], index: 1, kind: input, shape index: {}]   ;;  %s1422_s2 = inlined_call_operand.vmem [shape: f32[1,78], index: 2, kind: input, shape index: {}]   ;;  %s1423_s3 = inlined_call_operand.vmem [shape: bf16[2,16,100], index: 3, kind: input, shape index: {}]   ;;  %s1424_s4 = inlined_call_operand.vmem [shape: f32[2,32,2], index: 4, kind: output, shape index: {}]  }
   0x1 LB: > { %s1052_s16 = sadd.s32 4294967295, %s1260_s15   ;;  %p1056_p0 = scmp.ge.s32.totalorder %s1260_s15, 1  ;;  %s1260_s15 = sphi %s1296_s15, %s14_s15  }
   0x2   : > { %p162_p1 = scmp.lt.s32.totalorder %s1260_s15, 3 }
   0x4   : > { %p163_p2 = pnand %p1056_p0, %p162_p1 }
   0x5   : > { %p188_p3 = scmp.lt.s32.totalorder (!%p163_p2), %s1052_s16, 1  ;;  %s1262_s25 = smov (!%p163_p2), 127  }
   0x6   : > { %166 = sbr.rel (%p163_p2) target bundleno = 534 (0x216), region = 36  ;;  %s1263_s26 = smov (!%p163_p2), 118  }
   0x7   : > { %s1264_s5 = smov (!%p163_p2), 126   ;;  %s1265_s6 = smov (!%p163_p2), 117  }
   0x8   : > { %s1266_s7 = smov (!%p163_p2), 116   ;;  %s1267_s8 = smov (!%p163_p2), 108  }
   0x9   : > { %s1268_s9 = smov (!%p163_p2), 107   ;;  %s1269_s10 = smov (!%p163_p2), 106  }
   0xb   : > { %v1236_v0 = vld [vmem:[%s1420_s0 + $0x10] sm:$0xff]   ;;  %vm228_vm0 = vcmask 130048   ;;  %s1426_s16 = smov (!%p188_p3, %s1052_s16), 1  ;;  %v1237_v1 = vld [vmem:[%s1420_s0] sm:$0xff]   ;;  %v1239_v3 = vld [vmem:[%s1420_s0 + $0x8] sm:$0xff]   ;;  %v1270_v7 = vmov 0  }
   0xc   : > { %1164 = vmatprep.mubr.msk.bf16.mxu0 %vm228_vm0, %v1236_v0  ;;  %s1133_s21 = sshll.u32 %s1426_s16, 3  ;;  %1170 = vmatprep.mubr.msk.bf16.mxu1 %vm228_vm0, %v1237_v1  ;;  %v1242_v4 = vld [vmem:[%s1420_s0 + $0x30] sm:$0xff]   ;;  %v890_v5 = vld [vmem:[%s1421_s1 + $0x8] sm:$0xff]  ;;  %v889_v6 = vld [vmem:[%s1421_s1] sm:$0xff]  ;;  %vm938_vm1 = vcmask 637952   ;;  %s1134_s27 = sshll.u32 %s1426_s16, 5 }
   0xd   : > { %s192_s24 = scalar_lea.vmem %s1423_s3, %s1133_s21  ;;  %1234 = vset.pattern.permute.xlu1 %v1270_v7  ;;  %1233 = vset.pattern.permute.xlu0 %v1270_v7  ;;  %v891_v8 = vld [vmem:[%s1421_s1 + $0x10] sm:$0xff]  ;;  %v892_v9 = vld [vmem:[%s1421_s1 + $0x18] sm:$0xff]  ;;  %v1240_v13 = vld [vmem:[%s1420_s0 + $0x20] sm:$0xff]   ;;  %vm987_vm2 = vcmask 7168   ;;  %vm992_vm3 = vcmask 15360   ;;  %s197_s30 = scalar_lea.vmem %s1424_s4, %s1134_s27 }
   0xe   : > { %v1235_v2 = vld [vmem:[%s192_s24] sm:$0xff]   ;;  %v1238_v12 = vld [vmem:[%s1420_s0 + $0x18] sm:$0xff]   ;;  %v1246_v17 = vld [vmem:[%s1420_s0 + $0x50] sm:$0xff]  }
   0xf   : > { %225 = vrot.lane.b32.xlu0 %v1235_v2, %s1262_s25  ;;  %442 = vrot.lane.b32.xlu1 %v1235_v2, %s1263_s26  ;;  %v1243_v14 = vld [vmem:[%s1420_s0 + $0x38] sm:$0xff]   ;;  %v1241_v19 = vld [vmem:[%s1420_s0 + $0x28] sm:$0xff]  }
  0x10   : > { %1168 = vmatprep.subr.bf16.mxu1 %v1235_v2  ;;  %v1244_v20 = vld [vmem:[%s1420_s0 + $0x40] sm:$0xff]   ;;  %v1247_v21 = vld [vmem:[%s1420_s0 + $0x58] sm:$0xff]   ;;  %v1250_v24 = vld [vmem:[%s1420_s0 + $0x70] sm:$0xff]  }
  0x11   : > { %1169 = vmatpush3.bf16.msra.mxu1 %v1235_v2  ;;  %v1245_v25 = vld [vmem:[%s1420_s0 + $0x48] sm:$0xff]   ;;  %v1248_v26 = vld [vmem:[%s1420_s0 + $0x60] sm:$0xff]   ;;  %v1251_v27 = vld [vmem:[%s1420_s0 + $0x78] sm:$0xff]  }
  0x12   : > { %v1249_v29 = vld [vmem:[%s1420_s0 + $0x68] sm:$0xff]   ;;  %v1252_v30 = vld [vmem:[%s1420_s0 + $0x80] sm:$0xff]  }
  0x13   : > { %365 = vrot.lane.b32.xlu0 %v1235_v2, %s1264_s5  ;;  %519 = vrot.lane.b32.xlu1 %v1235_v2, %s1265_s6  ;;  %v1253_v31 = vld [vmem:[%s1420_s0 + $0x88] sm:$0xff]  }
  0x14   : > { %1171 = vmatmul.mubr.msk.bf16.vlgmr.msra.gmra.mxu1 %vm228_vm0, %v1239_v3 }
  0x15   : > { %1182 = vmatprep.mubr.msk.bf16.mxu1 %vm228_vm0, %v1242_v4 }
  0x17   : > { %596 = vrot.lane.b32.xlu0 %v1235_v2, %s1266_s7  ;;  %673 = vrot.lane.b32.xlu1 %v1235_v2, %s1267_s8 }
  0x1b   : > { %750 = vrot.lane.b32.xlu0 %v1235_v2, %s1268_s9  ;;  %827 = vrot.lane.b32.xlu1 %v1235_v2, %s1269_s10 }
  0x1f   : > { %900 = vperm.xlu1 %1234, %v890_v5   ;;  %895 = vperm.xlu0 %1233, %v889_v6  }
  0x23   : > { %905 = vperm.xlu1 %1234, %v891_v8   ;;  %910 = vperm.xlu0 %1233, %v892_v9  }
  0x81   : > { %v226_v10 = vpop.permute.xlu0 %225  ;;  %v443_v11 = vpop.permute.xlu1 %442 }
  0x82   : > { %1162 = vmatprep.subr.bf16.mxu0 %v226_v10  ;;  %1180 = vmatprep.subr.bf16.mxu1 %v443_v11 }
  0x83   : > { %1163 = vmatpush3.bf16.msra.mxu0 %v226_v10  ;;  %1181 = vmatpush3.bf16.msra.mxu1 %v443_v11 }
  0x85   : > { %v366_v15 = vpop.permute.xlu0 %365  ;;  %v520_v16 = vpop.permute.xlu1 %519 }
  0x86   : > { %1165 = vmatmul.mubr.msk.bf16.vlgmr.msra.gmra.mxu0 %vm228_vm0, %v1238_v12  ;;  %1174 = vmatprep.subr.bf16.mxu0 %v366_v15 }
  0x87   : > { %1175 = vmatpush3.bf16.msra.mxu0 %v366_v15  ;;  %1176 = vmatprep.mubr.msk.bf16.mxu0 %vm228_vm0, %v1240_v13 }
  0x88   : > { %1186 = vmatprep.subr.bf16.mxu0 %v520_v16  ;;  %1183 = vmatmul.mubr.msk.bf16.vlgmr.msra.gmra.mxu1 %vm228_vm0, %v1243_v14 }
  0x89   : > { %v597_v18 = vpop.permute.xlu0 %596  ;;  %1194 = vmatprep.mubr.msk.bf16.mxu1 %vm228_vm0, %v1246_v17  ;;  %v674_v22 = vpop.permute.xlu1 %673 }
  0x8a   : > { %1192 = vmatprep.subr.bf16.mxu1 %v597_v18 }
  0x8b   : > { %1193 = vmatpush3.bf16.msra.mxu1 %v597_v18 }
  0x8d   : > { %v751_v23 = vpop.permute.xlu0 %750  ;;  %v828_v28 = vpop.permute.xlu1 %827 }
  0x8e   : > { %1177 = vmatmul.mubr.msk.bf16.vlgmr.msra.gmra.mxu0 %vm228_vm0, %v1241_v19  ;;  %1204 = vmatprep.subr.bf16.mxu1 %v751_v23 }
  0x8f   : > { %1187 = vmatpush3.bf16.msra.mxu0 %v520_v16  ;;  %1188 = vmatprep.mubr.msk.bf16.mxu0 %vm228_vm0, %v1244_v20 }
  0x90   : > { %1198 = vmatprep.subr.bf16.mxu0 %v674_v22  ;;  %1195 = vmatmul.mubr.msk.bf16.vlgmr.msra.gmra.mxu1 %vm228_vm0, %v1247_v21 }
  0x91   : > { %1205 = vmatpush3.bf16.msra.mxu1 %v751_v23  ;;  %1206 = vmatprep.mubr.msk.bf16.mxu1 %vm228_vm0, %v1250_v24 }
  0x96   : > { %1189 = vmatmul.mubr.msk.bf16.vlgmr.msra.gmra.mxu0 %vm228_vm0, %v1245_v25 }
  0x97   : > { %1199 = vmatpush3.bf16.msra.mxu0 %v674_v22  ;;  %1200 = vmatprep.mubr.msk.bf16.mxu0 %vm228_vm0, %v1248_v26 }
  0x98   : > { %1210 = vmatprep.subr.bf16.mxu0 %v828_v28  ;;  %1207 = vmatmul.mubr.msk.bf16.vlgmr.msra.gmra.mxu1 %vm228_vm0, %v1251_v27 }
  0x9a   : > { %v901_v10 = vpop.permute.xlu1 %900  ;;  %v896_v23 = vpop.permute.xlu0 %895 }
  0x9e   : > { %1201 = vmatmul.mubr.msk.bf16.vlgmr.msra.gmra.mxu0 %vm228_vm0, %v1249_v29  ;;  %v906_v24 = vpop.permute.xlu1 %905 }
  0x9f   : > { %1211 = vmatpush3.bf16.msra.mxu0 %v828_v28  ;;  %1212 = vmatprep.mubr.msk.bf16.mxu0 %vm228_vm0, %v1252_v30 }
  0xa6   : > { %1213 = vmatmul.mubr.msk.bf16.vlgmr.msra.gmra.mxu0 %vm228_vm0, %v1253_v31 }
  0xd4   : > { %v1172_v32 = vpop.f32.mrf.mxu1 }
  0xd6   : > { %v335_v33 = vpop.f32.mrf.mxu1 }
  0xd8   : > { %v1173_v34 = vpop.f32.mrf.mxu1 }
  0xda   : > { %v338_v35 = vpop.f32.mrf.mxu1 }
 0x146   : > { %v1166_v36 = vpop.f32.mrf.mxu0 }
 0x147   : > { %v344_v49 = vadd.f32 %v1172_v32, %v1166_v36 }
 0x148   : > { %v269_v37 = vpop.f32.mrf.mxu0  ;;  %v1184_v38 = vpop.f32.mrf.mxu1 }
 0x149   : > { %v336_v51 = vadd.f32 %v335_v33, %v269_v37 }
 0x14a   : > { %v1167_v39 = vpop.f32.mrf.mxu0  ;;  %v485_v40 = vpop.f32.mrf.mxu1 }
 0x14b   : > { %v347_v55 = vadd.f32 %v1173_v34, %v1167_v39  ;;  %v911_v39 = vpop.permute.xlu0 %910 }
 0x14c   : > { %v272_v41 = vpop.f32.mrf.mxu0  ;;  %v1185_v42 = vpop.f32.mrf.mxu1 }
 0x14d   : > { %v339_v58 = vadd.f32 %v338_v35, %v272_v41 }
 0x14e   : > { %v1178_v43 = vpop.f32.mrf.mxu0  ;;  %v488_v44 = vpop.f32.mrf.mxu1 }
 0x14f   : > { %v425_v52 = vadd.f32 %v1178_v43, %v344_v49 }
 0x150   : > { %v408_v45 = vpop.f32.mrf.mxu0  ;;  %v1196_v46 = vpop.f32.mrf.mxu1 }
 0x151   : > { %v423_v56 = vadd.f32 %v408_v45, %v336_v51  ;;  %v502_v59 = vadd.f32 %v1184_v38, %v425_v52 }
 0x152   : > { %v1179_v47 = vpop.f32.mrf.mxu0  ;;  %v639_v48 = vpop.f32.mrf.mxu1 }
 0x153   : > { %v426_v60 = vadd.f32 %v1179_v47, %v347_v55  ;;  %v500_v63 = vadd.f32 %v485_v40, %v423_v56 }
 0x154   : > { %v411_v50 = vpop.f32.mrf.mxu0  ;;  %v1197_v54 = vpop.f32.mrf.mxu1 }
 0x155   : > { %v424_v0 = vadd.f32 %v411_v50, %v339_v58  ;;  %v503_v3 = vadd.f32 %v1185_v42, %v426_v60 }
 0x156   : > { %v1190_v53 = vpop.f32.mrf.mxu0  ;;  %v642_v62 = vpop.f32.mrf.mxu1 }
 0x157   : > { %v579_v1 = vadd.f32 %v1190_v53, %v502_v59  ;;  %v501_v7 = vadd.f32 %v488_v44, %v424_v0  ;;  %v1130_v44 = vld [vmem:[%s1422_s2] ss:$0 sm:$0xff] }
 0x158   : > { %v562_v57 = vpop.f32.mrf.mxu0  ;;  %v1208_v6 = vpop.f32.mrf.mxu1 }
 0x159   : > { %v577_v4 = vadd.f32 %v562_v57, %v500_v63  ;;  %v656_v8 = vadd.f32 %v1196_v46, %v579_v1 }
 0x15a   : > { %v1191_v61 = vpop.f32.mrf.mxu0  ;;  %v793_v15 = vpop.f32.mrf.mxu1 }
 0x15b   : > { %v580_v9 = vadd.f32 %v1191_v61, %v503_v3  ;;  %v654_v12 = vadd.f32 %v639_v48, %v577_v4 }
 0x15c   : > { %v565_v2 = vpop.f32.mrf.mxu0  ;;  %v1209_v25 = vpop.f32.mrf.mxu1 }
 0x15d   : > { %v578_v13 = vadd.f32 %v565_v2, %v501_v7  ;;  %v657_v17 = vadd.f32 %v1197_v54, %v580_v9 }
 0x15e   : > { %v1202_v5 = vpop.f32.mrf.mxu0  ;;  %v796_v34 = vpop.f32.mrf.mxu1 }
 0x15f   : > { %v733_v14 = vadd.f32 %v1202_v5, %v656_v8  ;;  %v655_v20 = vadd.f32 %v642_v62, %v578_v13 }
 0x160   : > { %v716_v11 = vpop.f32.mrf.mxu0 }
 0x161   : > { %v731_v18 = vadd.f32 %v716_v11, %v654_v12  ;;  %v810_v21 = vadd.f32 %v1208_v6, %v733_v14 }
 0x162   : > { %v1203_v16 = vpop.f32.mrf.mxu0 }
 0x163   : > { %v734_v22 = vadd.f32 %v1203_v16, %v657_v17  ;;  %v808_v27 = vadd.f32 %v793_v15, %v731_v18 }
 0x164   : > { %v719_v19 = vpop.f32.mrf.mxu0 }
 0x165   : > { %v732_v28 = vadd.f32 %v719_v19, %v655_v20  ;;  %v811_v31 = vadd.f32 %v1209_v25, %v734_v22 }
 0x166   : > { %v1214_v26 = vpop.f32.mrf.mxu0 }
 0x167   : > { %v887_v29 = vadd.f32 %v1214_v26, %v810_v21  ;;  %v809_v36 = vadd.f32 %v796_v34, %v732_v28 }
 0x168   : > { %v870_v30 = vpop.f32.mrf.mxu0 }
 0x169   : > { %v915_v32 = vadd.f32 %v906_v24, %v887_v29  ;;  %v885_v33 = vadd.f32 %v870_v30, %v808_v27 }
 0x16a   : > { %v1215_v35 = vpop.f32.mrf.mxu0 }
 0x16b   : > { %v913_v37 = vadd.f32 %v896_v23, %v885_v33  ;;  %v888_v38 = vadd.f32 %v1215_v35, %v811_v31  ;;  %v919_v41 = vmax.f32 %v915_v32, 0.0 }
 0x16c   : > { %v873_v40 = vpop.f32.mrf.mxu0 }
 0x16d   : > { %v916_v42 = vadd.f32 %v911_v39, %v888_v38  ;;  %v886_v43 = vadd.f32 %v873_v40, %v809_v36  ;;  %v917_v45 = vmax.f32 %v913_v37, 0.0  ;;  %v930_v48 = vmul.f32 %v1130_v44, %v919_v41 }
 0x16f   : > { %v920_v46 = vmax.f32 %v916_v42, 0.0  ;;  %v914_v47 = vadd.f32 %v901_v10, %v886_v43  ;;  %v928_v51 = vmul.f32 %v1130_v44, %v917_v45 }
 0x171   : > { %v931_v49 = vmul.f32 %v1130_v44, %v920_v46  ;;  %v918_v50 = vmax.f32 %v914_v47, 0.0 }
 0x173   : > { %v929_v52 = vmul.f32 %v1130_v44, %v918_v50  ;;  %v933_v53 = vpack.c.bf16 %v931_v49, %v930_v48 }
 0x175   : > { %v937_v54 = vunpack.c.h.bf16 %v933_v53  ;;  %v936_v55 = vunpack.c.l.bf16 %v933_v53  ;;  %v932_v56 = vpack.c.bf16 %v929_v52, %v928_v51 }
 0x177   : > { %v948_v57 = vsel %vm938_vm1, %v937_v54, 0.0  ;;  %v945_v58 = vsel %vm938_vm1, %v936_v55, 0.0  ;;  %v935_v59 = vunpack.c.h.bf16 %v932_v56  ;;  %v934_v60 = vunpack.c.l.bf16 %v932_v56 }
 0x178   : > { %949 = vadd.xlane.f32.xlu1 %v948_v57  ;;  %946 = vadd.xlane.f32.xlu0 %v945_v58  ;;  %v957_v3 = vmul.f32 %v936_v55, %v936_v55  ;;  %v958_v4 = vmul.f32 %v937_v54, %v937_v54 }
 0x179   : > { %v942_v61 = vsel %vm938_vm1, %v935_v59, 0.0  ;;  %v939_v62 = vsel %vm938_vm1, %v934_v60, 0.0  ;;  %v955_v63 = vmul.f32 %v934_v60, %v934_v60  ;;  %v956_v0 = vmul.f32 %v935_v59, %v935_v59 }
 0x17a   : > { %v965_v5 = vsel %vm938_vm1, %v957_v3, 0.0  ;;  %v968_v6 = vsel %vm938_vm1, %v958_v4, 0.0 }
 0x17b   : > { %v959_v1 = vsel %vm938_vm1, %v955_v63, 0.0  ;;  %v962_v2 = vsel %vm938_vm1, %v956_v0, 0.0 }
 0x17c   : > { %943 = vadd.xlane.f32.xlu0 %v942_v61  ;;  %940 = vadd.xlane.f32.xlu1 %v939_v62 }
 0x180   : > { %960 = vadd.xlane.f32.xlu0 %v959_v1  ;;  %963 = vadd.xlane.f32.xlu1 %v962_v2 }
 0x184   : > { %966 = vadd.xlane.f32.xlu0 %v965_v5  ;;  %969 = vadd.xlane.f32.xlu1 %v968_v6 }
 0x201   : > { %v950_v7 = vpop.xlane.xlu1 %949  ;;  %v947_v8 = vpop.xlane.xlu0 %946 }
 0x202   : > { %v954_v13 = vmul.f32 0.015625, %v950_v7  ;;  %v953_v14 = vmul.f32 0.015625, %v947_v8 }
 0x204   : > { %v978_v23 = vmul.f32 %v954_v13, %v954_v13  ;;  %v977_v24 = vmul.f32 %v953_v14, %v953_v14 }
 0x205   : > { %v944_v9 = vpop.xlane.xlu0 %943  ;;  %v941_v10 = vpop.xlane.xlu1 %940 }
 0x206   : > { %v952_v11 = vmul.f32 0.015625, %v944_v9  ;;  %v951_v12 = vmul.f32 0.015625, %v941_v10 }
 0x208   : > { %v976_v17 = vmul.f32 %v952_v11, %v952_v11  ;;  %v975_v18 = vmul.f32 %v951_v12, %v951_v12 }
 0x209   : > { %v961_v15 = vpop.xlane.xlu0 %960  ;;  %v964_v16 = vpop.xlane.xlu1 %963 }
 0x20a   : > { %v971_v19 = vmul.f32 0.015625, %v961_v15  ;;  %v972_v20 = vmul.f32 0.015625, %v964_v16 }
 0x20c   : > { %v979_v21 = vsub.f32 %v971_v19, %v975_v18  ;;  %v980_v22 = vsub.f32 %v972_v20, %v976_v17 }
 0x20d   : > { %v967_v25 = vpop.xlane.xlu0 %966  ;;  %v970_v26 = vpop.xlane.xlu1 %969 }
 0x20e   : > { %v983_v27 = vmax.f32 %v979_v21, 0.0  ;;  %v984_v28 = vmax.f32 %v980_v22, 0.0  ;;  %v973_v29 = vmul.f32 0.015625, %v967_v25  ;;  %v974_v30 = vmul.f32 0.015625, %v970_v26 }
 0x210   : > { %v988_v31 = vsel %vm987_vm2, %v951_v12, %v983_v27  ;;  %v989_v32 = vsel %vm987_vm2, %v952_v11, %v984_v28  ;;  %v981_v33 = vsub.f32 %v973_v29, %v977_v24  ;;  %v982_v34 = vsub.f32 %v974_v30, %v978_v23 }
 0x211   : > { %993 = vst.msk [vmem:[%s197_s30] sm:$0xff] %vm992_vm3, %v988_v31  ;;  %994 = vst.msk [vmem:[%s197_s30 + $0x8] sm:$0xff] %vm992_vm3, %v989_v32 }
 0x212   : > { %v985_v35 = vmax.f32 %v981_v33, 0.0  ;;  %v986_v36 = vmax.f32 %v982_v34, 0.0 }
 0x214   : > { %v990_v37 = vsel %vm987_vm2, %v953_v14, %v985_v35  ;;  %v991_v38 = vsel %vm987_vm2, %v954_v13, %v986_v36 }
 0x215   : > { %995 = vst.msk [vmem:[%s197_s30 + $0x10] sm:$0xff] %vm992_vm3, %v990_v37  ;;  %996 = vst.msk [vmem:[%s197_s30 + $0x18] sm:$0xff] %vm992_vm3, %v991_v38 }
 0x216 PF: > { %s14_s15 = sadd.s32 1, %s1260_s15  }
 0x217   : > { %p11_p4 = scmp.ge.s32.totalorder %s14_s15, 4  }
 0x219   :  { %13 = sbr.rel (!%p11_p4) target bundleno = 1 (0x1), region = 74 }

</bundles_post_ra>
